<compile_context>
chip_gen: v7x
topology: tpu7x:2x2x1
jax: 0.10.0
libtpu: 0.0.40
codegen_flags: <defaults>
</compile_context>

<pallas_src>
import jax
import jax.numpy as jnp
from jax.experimental import pallas as pl
from jax.experimental.pallas import tpu as pltpu

IN_FEATURES = 312
HID_FEATURES = 250
OUT_FEATURES = 500
HID_PAD = 256          # 250 -> 256 (multiple of 128) for the inner dim only
BN_EPS = 1e-5
MAX_TM = 2048          # batch rows per grid step
VMEM_LIMIT = 40 << 20  # fits TM=2048 double-buffered tiles on v5e/v6e/v7x


# ----------------------------------------------------------------------------
# Kernel: relu(x @ w1 + b1) -> relu(h @ w2 + b2)   (BN + bias pre-folded)
# ----------------------------------------------------------------------------
def _mlp_kernel(x_ref, w1_ref, b1_ref, w2_ref, b2_ref, out_ref):
    h = jnp.dot(x_ref[...], w1_ref[...], preferred_element_type=jnp.float32)
    h = jnp.maximum(h + b1_ref[...], 0.0)             # Linear+BN+ReLU (Dropout=id)
    o = jnp.dot(h, w2_ref[...], preferred_element_type=jnp.float32)
    out_ref[...] = jnp.maximum(o + b2_ref[...], 0.0)  # Linear+BN+ReLU (Dropout=id)


def _pick_tm(B):
    """Batch tile: big for DMA efficiency, >=2 grid steps so both v7x TCs work."""
    if B <= 8:
        return B                        # single tile; tm == full dim is legal
    tm = min(MAX_TM, pl.cdiv(B, 2))     # at least two grid steps
    tm = ((tm + 7) // 8) * 8            # respect the (8,128) sublane rule
    return min(tm, B)


def _build_forward(B, single_buffer_weights):
    tm = _pick_tm(B)
    grid = (pl.cdiv(B, tm),)

    # Resident operands: constant index_map, so request single buffering.
    res_kw = {"pipeline_mode": pl.Buffered(1)} if single_buffer_weights else {}
    in_specs = [
        # x tile marches over the batch axis
        pl.BlockSpec((tm, IN_FEATURES), lambda i: (i, 0)),
        # weights / folded biases stay resident across grid steps
        pl.BlockSpec((IN_FEATURES, HID_PAD), lambda i: (0, 0), **res_kw),
        pl.BlockSpec((1, HID_PAD), lambda i: (0, 0), **res_kw),
        pl.BlockSpec((HID_PAD, OUT_FEATURES), lambda i: (0, 0), **res_kw),
        pl.BlockSpec((1, OUT_FEATURES), lambda i: (0, 0), **res_kw),
    ]

    flops = 2 * B * (IN_FEATURES * HID_PAD + HID_PAD * OUT_FEATURES)
    param_elems = (IN_FEATURES * HID_PAD + HID_PAD
                   + HID_PAD * OUT_FEATURES + OUT_FEATURES)
    bytes_accessed = 4 * (B * IN_FEATURES + B * OUT_FEATURES + param_elems)

    return pl.pallas_call(
        _mlp_kernel,
        out_shape=jax.ShapeDtypeStruct((B, OUT_FEATURES), jnp.float32),
        grid_spec=pltpu.PrefetchScalarGridSpec(
            num_scalar_prefetch=0,
            grid=grid,
            in_specs=in_specs,
            out_specs=pl.BlockSpec((tm, OUT_FEATURES), lambda i: (i, 0)),
        ),
        compiler_params=pltpu.CompilerParams(
            dimension_semantics=("parallel",),
            vmem_limit_bytes=VMEM_LIMIT),
        cost_estimate=pl.CostEstimate(
            flops=flops, transcendentals=0, bytes_accessed=bytes_accessed),
    )


def attributes_model_forward(x, params):
    """x: [B, 312] float32 -> [B, 500] float32 (eval-mode forward)."""
    B = x.shape[0]
    args = (x, params["w1"], params["b1"], params["w2"], params["b2"])
    try:
        return _build_forward(B, single_buffer_weights=True)(*args)
    except Exception:
        # pipeline_mode=pl.Buffered(1) unsupported on this jax build ->
        # fall back to default double-buffered resident weights (correct,
        # just ~0.85 MB more VMEM).
        return _build_forward(B, single_buffer_weights=False)(*args)


# ----------------------------------------------------------------------------
# Parameter construction: nn.Linear-style init + fresh BN stats, then fold
# eval-mode BN + bias into the weights and zero-pad the hidden dim to 256.
# ----------------------------------------------------------------------------
def init_raw_params(key):
    k1, k2, k3, k4 = jax.random.split(key, 4)

    def linear_init(kw, kb, fan_in, fan_out):
        bound = 1.0 / jnp.sqrt(fan_in)
        w = jax.random.uniform(kw, (fan_in, fan_out), jnp.float32, -bound, bound)
        b = jax.random.uniform(kb, (fan_out,), jnp.float32, -bound, bound)
        return w, b

    def bn_init(n):
        return dict(gamma=jnp.ones((n,), jnp.float32),
                    beta=jnp.zeros((n,), jnp.float32),
                    mean=jnp.zeros((n,), jnp.float32),
                    var=jnp.ones((n,), jnp.float32))

    w1, b1 = linear_init(k1, k2, IN_FEATURES, HID_FEATURES)
    w2, b2 = linear_init(k3, k4, HID_FEATURES, OUT_FEATURES)
    return {"w1": w1, "b1": b1, "bn1": bn_init(HID_FEATURES),
            "w2": w2, "b2": b2, "bn2": bn_init(OUT_FEATURES)}


def prepare_kernel_params(raw):
    """Fold eval-mode BN + bias into (w, b); zero-pad the hidden dim only."""
    def fold(w, b, bn):
        scale = bn["gamma"] / jnp.sqrt(bn["var"] + BN_EPS)
        return w * scale[None, :], (b - bn["mean"]) * scale + bn["beta"]

    w1f, b1f = fold(raw["w1"], raw["b1"], raw["bn1"])
    w2f, b2f = fold(raw["w2"], raw["b2"], raw["bn2"])

    # Padded hidden columns carry zero weight and zero bias -> relu(0) = 0,
    # and the matching w2 rows are zero, so they contribute nothing.
    w1p = jnp.zeros((IN_FEATURES, HID_PAD), jnp.float32).at[:, :HID_FEATURES].set(w1f)
    b1p = jnp.zeros((1, HID_PAD), jnp.float32).at[0, :HID_FEATURES].set(b1f)
    w2p = jnp.zeros((HID_PAD, OUT_FEATURES), jnp.float32).at[:HID_FEATURES, :].set(w2f)
    b2p = b2f.reshape(1, OUT_FEATURES)
    return {"w1": w1p, "b1": b1p, "w2": w2p, "b2": b2p}


# ----------------------------------------------------------------------------
# Pure-JAX reference using the RAW (unfolded, unpadded) parameters.
# ----------------------------------------------------------------------------
def _reference(x, raw):
    def bn(y, p):
        return (y - p["mean"]) / jnp.sqrt(p["var"] + BN_EPS) * p["gamma"] + p["beta"]

    h = x @ raw["w1"] + raw["b1"]
    h = jnp.maximum(bn(h, raw["bn1"]), 0.0)
    o = h @ raw["w2"] + raw["b2"]
    return jnp.maximum(bn(o, raw["bn2"]), 0.0)


if __name__ == "__main__":
    key = jax.random.PRNGKey(0)
    kx, kp = jax.random.split(key)

    B = 8
    x = jax.random.normal(kx, (B, IN_FEATURES), jnp.float32)

    raw = init_raw_params(kp)
    params = prepare_kernel_params(raw)

    out = attributes_model_forward(x, params)
    out = jax.block_until_ready(out)

    ref = _reference(x, raw)
    assert out.shape == (B, OUT_FEATURES)
    assert jnp.allclose(out, ref, atol=1e-4, rtol=1e-4)

    print("KERNEL_OK")
</pallas_src>

<mosaic_0001>
module attributes {stable_mosaic.version = 11 : i64} {
  func.func @_mlp_kernel(%arg0: i32, %arg1: memref<8x312xf32, #tpu.memory_space<vmem>>, %arg2: memref<312x256xf32, #tpu.memory_space<vmem>>, %arg3: memref<1x256xf32, #tpu.memory_space<vmem>>, %arg4: memref<256x500xf32, #tpu.memory_space<vmem>>, %arg5: memref<1x500xf32, #tpu.memory_space<vmem>>, %arg6: memref<8x500xf32, #tpu.memory_space<vmem>>) attributes {dimension_semantics = [#tpu.dimension_semantics<parallel>], iteration_bounds = array<i64: 1>, scalar_prefetch = 0 : i64, scratch_operands = 0 : i64, tpu.core_type = #tpu.core_type<tc>, window_params = [{transform_indices = @transform_0, window_bounds = array<i64: 8, 312>}, {pipeline_mode = #tpu.pipeline_mode<synchronous>, transform_indices = @transform_1, window_bounds = array<i64: 312, 256>}, {pipeline_mode = #tpu.pipeline_mode<synchronous>, transform_indices = @transform_2, window_bounds = array<i64: 1, 256>}, {pipeline_mode = #tpu.pipeline_mode<synchronous>, transform_indices = @transform_3, window_bounds = array<i64: 256, 500>}, {pipeline_mode = #tpu.pipeline_mode<synchronous>, transform_indices = @transform_4, window_bounds = array<i64: 1, 500>}, {transform_indices = @transform_5, window_bounds = array<i64: 8, 500>}]} {
    %c0 = arith.constant 0 : index
    %c0_0 = arith.constant 0 : index
    %0 = vector.load %arg1[%c0, %c0_0] : memref<8x312xf32, #tpu.memory_space<vmem>>, vector<8x312xf32>
    %c0_1 = arith.constant 0 : index
    %c0_2 = arith.constant 0 : index
    %1 = vector.load %arg2[%c0_1, %c0_2] : memref<312x256xf32, #tpu.memory_space<vmem>>, vector<312x256xf32>
    %cst = arith.constant dense<0.000000e+00> : vector<8x256xf32>
    %2 = tpu.matmul %0, %1, %cst {dimension_numbers = #tpu.dot_dimension_numbers<[1], [0], [0], [1], [0, 0, 1, 1], [], []>} : vector<8x312xf32>, vector<312x256xf32>, vector<8x256xf32> -> vector<8x256xf32>
    %c0_3 = arith.constant 0 : index
    %c0_4 = arith.constant 0 : index
    %3 = vector.load %arg3[%c0_3, %c0_4] : memref<1x256xf32, #tpu.memory_space<vmem>>, vector<1x256xf32>
    %4 = vector.broadcast %3 : vector<1x256xf32> to vector<8x256xf32>
    %5 = arith.addf %2, %4 : vector<8x256xf32>
    %cst_5 = arith.constant 0.000000e+00 : f32
    %6 = vector.broadcast %cst_5 : f32 to vector<8x256xf32>
    %7 = arith.maximumf %5, %6 : vector<8x256xf32>
    %c0_6 = arith.constant 0 : index
    %c0_7 = arith.constant 0 : index
    %8 = vector.load %arg4[%c0_6, %c0_7] : memref<256x500xf32, #tpu.memory_space<vmem>>, vector<256x500xf32>
    %cst_8 = arith.constant dense<0.000000e+00> : vector<8x500xf32>
    %9 = tpu.matmul %7, %8, %cst_8 {dimension_numbers = #tpu.dot_dimension_numbers<[1], [0], [0], [1], [0, 0, 1, 1], [], []>} : vector<8x256xf32>, vector<256x500xf32>, vector<8x500xf32> -> vector<8x500xf32>
    %c0_9 = arith.constant 0 : index
    %c0_10 = arith.constant 0 : index
    %10 = vector.load %arg5[%c0_9, %c0_10] : memref<1x500xf32, #tpu.memory_space<vmem>>, vector<1x500xf32>
    %11 = vector.broadcast %10 : vector<1x500xf32> to vector<8x500xf32>
    %12 = arith.addf %9, %11 : vector<8x500xf32>
    %cst_11 = arith.constant 0.000000e+00 : f32
    %13 = vector.broadcast %cst_11 : f32 to vector<8x500xf32>
    %14 = arith.maximumf %12, %13 : vector<8x500xf32>
    %c0_12 = arith.constant 0 : index
    %c0_13 = arith.constant 0 : index
    %15 = vector.load %arg6[%c0_12, %c0_13] : memref<8x500xf32, #tpu.memory_space<vmem>>, vector<8x500xf32>
    tpu.vector_store %arg6[%c0_12, %c0_13], %14 {strides = array<i32>} : memref<8x500xf32, #tpu.memory_space<vmem>>, vector<8x500xf32>,
    return
  }
  func.func @transform_0(%arg0: i32) -> (i32, i32) {
    %c0_i32 = arith.constant 0 : i32
    %c0_i32_0 = arith.constant 0 : i32
    return %arg0, %c0_i32 : i32, i32
  }
  func.func @transform_1(%arg0: i32) -> (i32, i32) {
    %c0_i32 = arith.constant 0 : i32
    %c0_i32_0 = arith.constant 0 : i32
    %c0_i32_1 = arith.constant 0 : i32
    return %c0_i32, %c0_i32_0 : i32, i32
  }
  func.func @transform_2(%arg0: i32) -> (i32, i32) {
    %c0_i32 = arith.constant 0 : i32
    %c0_i32_0 = arith.constant 0 : i32
    %c0_i32_1 = arith.constant 0 : i32
    return %c0_i32, %c0_i32_0 : i32, i32
  }
  func.func @transform_3(%arg0: i32) -> (i32, i32) {
    %c0_i32 = arith.constant 0 : i32
    %c0_i32_0 = arith.constant 0 : i32
    %c0_i32_1 = arith.constant 0 : i32
    return %c0_i32, %c0_i32_0 : i32, i32
  }
  func.func @transform_4(%arg0: i32) -> (i32, i32) {
    %c0_i32 = arith.constant 0 : i32
    %c0_i32_0 = arith.constant 0 : i32
    %c0_i32_1 = arith.constant 0 : i32
    return %c0_i32, %c0_i32_0 : i32, i32
  }
  func.func @transform_5(%arg0: i32) -> (i32, i32) {
    %c0_i32 = arith.constant 0 : i32
    %c0_i32_0 = arith.constant 0 : i32
    return %arg0, %c0_i32 : i32, i32
  }
}

module attributes {stable_mosaic.version = 11 : i64} {
  func.func @_mlp_kernel(%arg0: i32, %arg1: memref<8x312xf32, #tpu.memory_space<vmem>>, %arg2: memref<312x256xf32, #tpu.memory_space<vmem>>, %arg3: memref<1x256xf32, #tpu.memory_space<vmem>>, %arg4: memref<256x500xf32, #tpu.memory_space<vmem>>, %arg5: memref<1x500xf32, #tpu.memory_space<vmem>>, %arg6: memref<8x500xf32, #tpu.memory_space<vmem>>) attributes {dimension_semantics = [#tpu.dimension_semantics<parallel>], iteration_bounds = array<i64: 1>, scalar_prefetch = 0 : i64, scratch_operands = 0 : i64, tpu.core_type = #tpu.core_type<tc>, window_params = [{transform_indices = @transform_0, window_bounds = array<i64: 8, 312>}, {pipeline_mode = #tpu.pipeline_mode<synchronous>, transform_indices = @transform_1, window_bounds = array<i64: 312, 256>}, {pipeline_mode = #tpu.pipeline_mode<synchronous>, transform_indices = @transform_2, window_bounds = array<i64: 1, 256>}, {pipeline_mode = #tpu.pipeline_mode<synchronous>, transform_indices = @transform_3, window_bounds = array<i64: 256, 500>}, {pipeline_mode = #tpu.pipeline_mode<synchronous>, transform_indices = @transform_4, window_bounds = array<i64: 1, 500>}, {transform_indices = @transform_5, window_bounds = array<i64: 8, 500>}]} {
    %c0 = arith.constant 0 : index
    %c0_0 = arith.constant 0 : index
    %0 = vector.load %arg1[%c0, %c0_0] : memref<8x312xf32, #tpu.memory_space<vmem>>, vector<8x312xf32>
    %c0_1 = arith.constant 0 : index
    %c0_2 = arith.constant 0 : index
    %1 = vector.load %arg2[%c0_1, %c0_2] : memref<312x256xf32, #tpu.memory_space<vmem>>, vector<312x256xf32>
    %cst = arith.constant dense<0.000000e+00> : vector<8x256xf32>
    %2 = tpu.matmul %0, %1, %cst {dimension_numbers = #tpu.dot_dimension_numbers<[1], [0], [0], [1], [0, 0, 1, 1], [], []>} : vector<8x312xf32>, vector<312x256xf32>, vector<8x256xf32> -> vector<8x256xf32>
    %c0_3 = arith.constant 0 : index
    %c0_4 = arith.constant 0 : index
    %3 = vector.load %arg3[%c0_3, %c0_4] : memref<1x256xf32, #tpu.memory_space<vmem>>, vector<1x256xf32>
    %4 = vector.broadcast %3 : vector<1x256xf32> to vector<8x256xf32>
    %5 = arith.addf %2, %4 : vector<8x256xf32>
    %cst_5 = arith.constant 0.000000e+00 : f32
    %6 = vector.broadcast %cst_5 : f32 to vector<8x256xf32>
    %7 = arith.maximumf %5, %6 : vector<8x256xf32>
    %c0_6 = arith.constant 0 : index
    %c0_7 = arith.constant 0 : index
    %8 = vector.load %arg4[%c0_6, %c0_7] : memref<256x500xf32, #tpu.memory_space<vmem>>, vector<256x500xf32>
    %cst_8 = arith.constant dense<0.000000e+00> : vector<8x500xf32>
    %9 = tpu.matmul %7, %8, %cst_8 {dimension_numbers = #tpu.dot_dimension_numbers<[1], [0], [0], [1], [0, 0, 1, 1], [], []>} : vector<8x256xf32>, vector<256x500xf32>, vector<8x500xf32> -> vector<8x500xf32>
    %c0_9 = arith.constant 0 : index
    %c0_10 = arith.constant 0 : index
    %10 = vector.load %arg5[%c0_9, %c0_10] : memref<1x500xf32, #tpu.memory_space<vmem>>, vector<1x500xf32>
    %11 = vector.broadcast %10 : vector<1x500xf32> to vector<8x500xf32>
    %12 = arith.addf %9, %11 : vector<8x500xf32>
    %cst_11 = arith.constant 0.000000e+00 : f32
    %13 = vector.broadcast %cst_11 : f32 to vector<8x500xf32>
    %14 = arith.maximumf %12, %13 : vector<8x500xf32>
    %c0_12 = arith.constant 0 : index
    %c0_13 = arith.constant 0 : index
    %15 = vector.load %arg6[%c0_12, %c0_13] : memref<8x500xf32, #tpu.memory_space<vmem>>, vector<8x500xf32>
    tpu.vector_store %arg6[%c0_12, %c0_13], %14 {strides = array<i32>} : memref<8x500xf32, #tpu.memory_space<vmem>>, vector<8x500xf32>,
    return
  }
  func.func @transform_0(%arg0: i32) -> (i32, i32) {
    %c0_i32 = arith.constant 0 : i32
    %c0_i32_0 = arith.constant 0 : i32
    return %arg0, %c0_i32 : i32, i32
  }
  func.func @transform_1(%arg0: i32) -> (i32, i32) {
    %c0_i32 = arith.constant 0 : i32
    %c0_i32_0 = arith.constant 0 : i32
    %c0_i32_1 = arith.constant 0 : i32
    return %c0_i32, %c0_i32_0 : i32, i32
  }
  func.func @transform_2(%arg0: i32) -> (i32, i32) {
    %c0_i32 = arith.constant 0 : i32
    %c0_i32_0 = arith.constant 0 : i32
    %c0_i32_1 = arith.constant 0 : i32
    return %c0_i32, %c0_i32_0 : i32, i32
  }
  func.func @transform_3(%arg0: i32) -> (i32, i32) {
    %c0_i32 = arith.constant 0 : i32
    %c0_i32_0 = arith.constant 0 : i32
    %c0_i32_1 = arith.constant 0 : i32
    return %c0_i32, %c0_i32_0 : i32, i32
  }
  func.func @transform_4(%arg0: i32) -> (i32, i32) {
    %c0_i32 = arith.constant 0 : i32
    %c0_i32_0 = arith.constant 0 : i32
    %c0_i32_1 = arith.constant 0 : i32
    return %c0_i32, %c0_i32_0 : i32, i32
  }
  func.func @transform_5(%arg0: i32) -> (i32, i32) {
    %c0_i32 = arith.constant 0 : i32
    %c0_i32_0 = arith.constant 0 : i32
    return %arg0, %c0_i32 : i32, i32
  }
}

</mosaic_0001>

<bundles_post_ra>
// kernel: tpu_custom_call.1
= control target key start
LH: loop header
LB: loop body
LE: loop exit
PB: predicated region body
PF: predicated region fallthrough
CT: control target
= control target key end

     0   :  { %s1510_s0 = inlined_call_operand.vmem [shape: f32[8,312], index: 0, kind: input, shape index: {}]   ;;  %s1511_s1 = inlined_call_operand.vmem [shape: f32[312,256], index: 1, kind: input, shape index: {}]   ;;  %s1512_s2 = inlined_call_operand.vmem [shape: f32[1,256], index: 2, kind: input, shape index: {}]   ;;  %s1513_s3 = inlined_call_operand.vmem [shape: f32[256,500], index: 3, kind: input, shape index: {}]   ;;  %s1514_s4 = inlined_call_operand.vmem [shape: f32[1,500], index: 4, kind: input, shape index: {}]   ;;  %s1515_s5 = inlined_call_operand.hbm [shape: f32[8,500], index: 5, kind: output, shape index: {}]  }
   0x1   :  { %v25_v0 = vld [vmem:[%s1511_s1 + $0x8] sm:$0xff]  ;;  %v27_v1 = vld [vmem:[%s1511_s1 + $0x18] sm:$0xff]  ;;  %v24_v2 = vld [vmem:[%s1511_s1] sm:$0xff] }
   0x2   :  { %v578_v3 = vpack.c.bf16 %v27_v1, %v25_v0  ;;  %v26_v4 = vld [vmem:[%s1511_s1 + $0x10] sm:$0xff]  ;;  %v29_v5 = vld [vmem:[%s1511_s1 + $0x28] sm:$0xff]  ;;  %v31_v6 = vld [vmem:[%s1511_s1 + $0x38] sm:$0xff] }
   0x3   :  { %v580_v7 = vpack.c.bf16 %v26_v4, %v24_v2  ;;  %v582_v8 = vpack.c.bf16 %v31_v6, %v29_v5  ;;  %v28_v9 = vld [vmem:[%s1511_s1 + $0x20] sm:$0xff]  ;;  %v30_v10 = vld [vmem:[%s1511_s1 + $0x30] sm:$0xff]  ;;  %v33_v11 = vld [vmem:[%s1511_s1 + $0x48] sm:$0xff] }
   0x4   :  { %579 = vmatprep.subr.bf16.mxu0 %v578_v3  ;;  %v35_v12 = vld [vmem:[%s1511_s1 + $0x58] sm:$0xff]  ;;  %v584_v13 = vpack.c.bf16 %v30_v10, %v28_v9  ;;  %v32_v15 = vld [vmem:[%s1511_s1 + $0x40] sm:$0xff]  ;;  %v34_v16 = vld [vmem:[%s1511_s1 + $0x50] sm:$0xff] }
   0x5   :  { %581 = vmatpush1.bf16.msra.mxu0 %v580_v7  ;;  %v586_v14 = vpack.c.bf16 %v35_v12, %v33_v11  ;;  %v37_v17 = vld [vmem:[%s1511_s1 + $0x68] sm:$0xff]  ;;  %v39_v18 = vld [vmem:[%s1511_s1 + $0x78] sm:$0xff]  ;;  %v588_v19 = vpack.c.bf16 %v34_v16, %v32_v15  ;;  %v36_v21 = vld [vmem:[%s1511_s1 + $0x60] sm:$0xff] }
   0x6   :  { %583 = vmatprep.subr.bf16.mxu0 %v582_v8  ;;  %v590_v20 = vpack.c.bf16 %v39_v18, %v37_v17  ;;  %v38_v22 = vld [vmem:[%s1511_s1 + $0x70] sm:$0xff]  ;;  %v41_v23 = vld [vmem:[%s1511_s1 + $0x88] sm:$0xff]  ;;  %v43_v24 = vld [vmem:[%s1511_s1 + $0x98] sm:$0xff] }
   0x7   :  { %v592_v25 = vpack.c.bf16 %v38_v22, %v36_v21  ;;  %v594_v26 = vpack.c.bf16 %v43_v24, %v41_v23  ;;  %v40_v27 = vld [vmem:[%s1511_s1 + $0x80] sm:$0xff]  ;;  %v42_v28 = vld [vmem:[%s1511_s1 + $0x90] sm:$0xff]  ;;  %v45_v29 = vld [vmem:[%s1511_s1 + $0xa8] sm:$0xff] }
   0x8   :  { %v47_v30 = vld [vmem:[%s1511_s1 + $0xb8] sm:$0xff]  ;;  %v596_v31 = vpack.c.bf16 %v42_v28, %v40_v27  ;;  %v44_v33 = vld [vmem:[%s1511_s1 + $0xa0] sm:$0xff]  ;;  %v46_v34 = vld [vmem:[%s1511_s1 + $0xb0] sm:$0xff] }
   0x9   :  { %585 = vmatpush1.bf16.msra.mxu0 %v584_v13  ;;  %v598_v32 = vpack.c.bf16 %v47_v30, %v45_v29  ;;  %v49_v35 = vld [vmem:[%s1511_s1 + $0xc8] sm:$0xff]  ;;  %v51_v36 = vld [vmem:[%s1511_s1 + $0xd8] sm:$0xff]  ;;  %v600_v37 = vpack.c.bf16 %v46_v34, %v44_v33  ;;  %v48_v39 = vld [vmem:[%s1511_s1 + $0xc0] sm:$0xff] }
   0xa   :  { %587 = vmatprep.subr.bf16.mxu0 %v586_v14  ;;  %v602_v38 = vpack.c.bf16 %v51_v36, %v49_v35  ;;  %v50_v40 = vld [vmem:[%s1511_s1 + $0xd0] sm:$0xff]  ;;  %v22_v41 = vld [vmem:[%s1510_s0 + $0x8] sm:$0xff]  ;;  %v55_v43 = vld [vmem:[%s1511_s1 + $0xf8] sm:$0xff] }
   0xb   :  { %v53_v42 = vld [vmem:[%s1511_s1 + $0xe8] sm:$0xff]  ;;  %182 = vmatprep.mubr.f32.mxu0 %v22_v41  ;;  %v604_v44 = vpack.c.bf16 %v50_v40, %v48_v39  ;;  %v52_v46 = vld [vmem:[%s1511_s1 + $0xe0] sm:$0xff]  ;;  %v54_v47 = vld [vmem:[%s1511_s1 + $0xf0] sm:$0xff] }
   0xc   :  { %v606_v45 = vpack.c.bf16 %v55_v43, %v53_v42  ;;  %v57_v48 = vld [vmem:[%s1511_s1 + $0x108] sm:$0xff]  ;;  %v59_v49 = vld [vmem:[%s1511_s1 + $0x118] sm:$0xff]  ;;  %v56_v50 = vld [vmem:[%s1511_s1 + $0x100] sm:$0xff]  ;;  %v608_v55 = vpack.c.bf16 %v54_v47, %v52_v46 }
   0xd   :  { %589 = vmatpush1.bf16.msra.mxu0 %v588_v19  ;;  %v58_v51 = vld [vmem:[%s1511_s1 + $0x110] sm:$0xff]  ;;  %v263_v52 = vld [vmem:[%s1513_s3 + $0x8] sm:$0xff]  ;;  %v262_v54 = vld [vmem:[%s1513_s3] sm:$0xff]  ;;  %v610_v60 = vpack.c.bf16 %v59_v49, %v57_v48 }
   0xe   :  { %591 = vmatprep.subr.bf16.mxu0 %v590_v20  ;;  %v267_v53 = vld [vmem:[%s1513_s3 + $0x28] sm:$0xff]  ;;  %v266_v57 = vld [vmem:[%s1513_s3 + $0x20] sm:$0xff]  ;;  %v63_v3 = vld [vmem:[%s1511_s1 + $0x138] sm:$0xff]  ;;  %v612_v6 = vpack.c.bf16 %v58_v51, %v56_v50 }
   0xf   :  { %v654_v56 = vpack.c.bf16 %v267_v53, %v263_v52  ;;  %v271_v58 = vld [vmem:[%s1513_s3 + $0x48] sm:$0xff]  ;;  %v656_v61 = vpack.c.bf16 %v266_v57, %v262_v54  ;;  %v270_v63 = vld [vmem:[%s1513_s3 + $0x40] sm:$0xff]  ;;  %v62_v12 = vld [vmem:[%s1511_s1 + $0x130] sm:$0xff] }
  0x10   :  { %v275_v59 = vld [vmem:[%s1513_s3 + $0x68] sm:$0xff]  ;;  %v274_v0 = vld [vmem:[%s1513_s3 + $0x60] sm:$0xff]  ;;  %v67_v16 = vld [vmem:[%s1511_s1 + $0x158] sm:$0xff] }
  0x11   :  { %593 = vmatpush1.bf16.msra.mxu0 %v592_v25  ;;  %v658_v62 = vpack.c.bf16 %v275_v59, %v271_v58  ;;  %v279_v1 = vld [vmem:[%s1513_s3 + $0x88] sm:$0xff]  ;;  %655 = vmatprep.subr.bf16.mxu1 %v654_v56  ;;  %v660_v5 = vpack.c.bf16 %v274_v0, %v270_v63  ;;  %v60_v7 = vld [vmem:[%s1511_s1 + $0x120] sm:$0xff]  ;;  %v66_v24 = vld [vmem:[%s1511_s1 + $0x150] sm:$0xff] }
  0x12   :  { %595 = vmatprep.subr.bf16.mxu0 %v594_v26  ;;  %v61_v2 = vld [vmem:[%s1511_s1 + $0x128] sm:$0xff]  ;;  %657 = vmatpush1.bf16.msra.mxu1 %v656_v61  ;;  %v278_v9 = vld [vmem:[%s1513_s3 + $0x80] sm:$0xff]  ;;  %v616_v18 = vpack.c.bf16 %v62_v12, %v60_v7  ;;  %v71_v28 = vld [vmem:[%s1511_s1 + $0x178] sm:$0xff] }
  0x13   :  { %v283_v4 = vld [vmem:[%s1513_s3 + $0xa8] sm:$0xff]  ;;  %659 = vmatprep.subr.bf16.mxu1 %v658_v62  ;;  %v282_v10 = vld [vmem:[%s1513_s3 + $0xa0] sm:$0xff]  ;;  %v614_v11 = vpack.c.bf16 %v63_v3, %v61_v2  ;;  %v70_v36 = vld [vmem:[%s1511_s1 + $0x170] sm:$0xff] }
  0x14   :  { %v662_v8 = vpack.c.bf16 %v283_v4, %v279_v1  ;;  %v287_v13 = vld [vmem:[%s1513_s3 + $0xc8] sm:$0xff]  ;;  %v664_v17 = vpack.c.bf16 %v282_v10, %v278_v9  ;;  %v64_v19 = vld [vmem:[%s1511_s1 + $0x140] sm:$0xff]  ;;  %v75_v40 = vld [vmem:[%s1511_s1 + $0x198] sm:$0xff] }
  0x15   :  { %597 = vmatpush1.bf16.msra.mxu0 %v596_v31  ;;  %v291_v14 = vld [vmem:[%s1513_s3 + $0xe8] sm:$0xff]  ;;  %v286_v21 = vld [vmem:[%s1513_s3 + $0xc0] sm:$0xff]  ;;  %v620_v30 = vpack.c.bf16 %v66_v24, %v64_v19  ;;  %v74_v48 = vld [vmem:[%s1511_s1 + $0x190] sm:$0xff] }
  0x16   :  { %599 = vmatprep.subr.bf16.mxu0 %v598_v32  ;;  %v65_v15 = vld [vmem:[%s1511_s1 + $0x148] sm:$0xff]  ;;  %661 = vmatpush1.bf16.msra.mxu1 %v660_v5  ;;  %v666_v20 = vpack.c.bf16 %v291_v14, %v287_v13  ;;  %v290_v22 = vld [vmem:[%s1513_s3 + $0xe0] sm:$0xff]  ;;  %v79_v52 = vld [vmem:[%s1511_s1 + $0x1b8] sm:$0xff] }
  0x17   :  { %663 = vmatprep.subr.bf16.mxu1 %v662_v8  ;;  %v618_v23 = vpack.c.bf16 %v67_v16, %v65_v15  ;;  %v295_v25 = vld [vmem:[%s1513_s3 + $0x108] sm:$0xff]  ;;  %v668_v29 = vpack.c.bf16 %v290_v22, %v286_v21  ;;  %v68_v31 = vld [vmem:[%s1511_s1 + $0x160] sm:$0xff] }
  0x18   :  { %v299_v26 = vld [vmem:[%s1513_s3 + $0x128] sm:$0xff]  ;;  %v294_v33 = vld [vmem:[%s1513_s3 + $0x100] sm:$0xff]  ;;  %v624_v42 = vpack.c.bf16 %v70_v36, %v68_v31 }
  0x19   :  { %601 = vmatpush1.bf16.msra.mxu0 %v600_v37  ;;  %v69_v27 = vld [vmem:[%s1511_s1 + $0x168] sm:$0xff]  ;;  %v670_v32 = vpack.c.bf16 %v299_v26, %v295_v25  ;;  %v298_v34 = vld [vmem:[%s1513_s3 + $0x120] sm:$0xff] }
  0x1a   :  { %603 = vmatprep.subr.bf16.mxu0 %v602_v38  ;;  %665 = vmatpush1.bf16.msra.mxu1 %v664_v17  ;;  %v622_v35 = vpack.c.bf16 %v71_v28, %v69_v27  ;;  %v303_v37 = vld [vmem:[%s1513_s3 + $0x148] sm:$0xff]  ;;  %v672_v41 = vpack.c.bf16 %v298_v34, %v294_v33  ;;  %v72_v43 = vld [vmem:[%s1511_s1 + $0x180] sm:$0xff] }
  0x1b   :  { %667 = vmatprep.subr.bf16.mxu1 %v666_v20  ;;  %v307_v38 = vld [vmem:[%s1513_s3 + $0x168] sm:$0xff]  ;;  %v306_v46 = vld [vmem:[%s1513_s3 + $0x160] sm:$0xff] }
  0x1c   :  { %v73_v39 = vld [vmem:[%s1511_s1 + $0x188] sm:$0xff] }
  0x1d   :  { %605 = vmatpush1.bf16.msra.mxu0 %v604_v44  ;;  %v674_v44 = vpack.c.bf16 %v307_v38, %v303_v37  ;;  %v626_v47 = vpack.c.bf16 %v75_v40, %v73_v39  ;;  %v311_v49 = vld [vmem:[%s1513_s3 + $0x188] sm:$0xff] }
  0x1e   :  { %607 = vmatprep.subr.bf16.mxu0 %v606_v45  ;;  %669 = vmatpush1.bf16.msra.mxu1 %v668_v29  ;;  %v302_v45 = vld [vmem:[%s1513_s3 + $0x140] sm:$0xff]  ;;  %v315_v50 = vld [vmem:[%s1513_s3 + $0x1a8] sm:$0xff] }
  0x1f   :  { %671 = vmatprep.subr.bf16.mxu1 %v670_v32  ;;  %v77_v51 = vld [vmem:[%s1511_s1 + $0x1a8] sm:$0xff]  ;;  %v676_v53 = vpack.c.bf16 %v306_v46, %v302_v45 }
  0x21   :  { %609 = vmatpush1.bf16.msra.mxu0 %v608_v55 }
  0x22   :  { %611 = vmatprep.subr.bf16.mxu0 %v610_v60  ;;  %673 = vmatpush1.bf16.msra.mxu1 %v672_v41 }
  0x25   :  { %613 = vmatpush1.bf16.msra.mxu0 %v612_v6 }
  0x26   :  { %615 = vmatprep.subr.bf16.mxu0 %v614_v11 }
  0x29   :  { %617 = vmatpush1.bf16.msra.mxu0 %v616_v18 }
  0x2a   :  { %619 = vmatprep.subr.bf16.mxu0 %v618_v23 }
  0x2d   :  { %621 = vmatpush1.bf16.msra.mxu0 %v620_v30 }
  0x2e   :  { %623 = vmatprep.subr.bf16.mxu0 %v622_v35 }
  0x2f   :  { %10 = vsyncpa [#allocation3], 0  ;;  %v628_v54 = vpack.c.bf16 %v74_v48, %v72_v43  ;;  %v76_v55 = vld [vmem:[%s1511_s1 + $0x1a0] sm:$0xff]  ;;  %675 = vmatprep.subr.bf16.mxu1 %v674_v44  ;;  %v678_v56 = vpack.c.bf16 %v315_v50, %v311_v49  ;;  %v630_v59 = vpack.c.bf16 %v79_v52, %v77_v51  ;;  %v78_v60 = vld [vmem:[%s1511_s1 + $0x1b0] sm:$0xff]  ;;  %vm114_vm0 = vcmask 457728  }
  0x30   :  { %v310_v57 = vld [vmem:[%s1513_s3 + $0x180] sm:$0xff]  ;;  %v319_v61 = vld [vmem:[%s1513_s3 + $0x1c8] sm:$0xff]  ;;  %v83_v0 = vld [vmem:[%s1511_s1 + $0x1d8] sm:$0xff]  ;;  %677 = vmatpush1.bf16.msra.mxu1 %v676_v53  ;;  %v632_v2 = vpack.c.bf16 %v78_v60, %v76_v55  ;;  %v812_v53 = vmov 0.0   ;;  %vm561_vm1 = vcmask 949248  }
  0x31   :  { %625 = vmatpush1.bf16.msra.mxu0 %v624_v42  ;;  %v314_v58 = vld [vmem:[%s1513_s3 + $0x1a0] sm:$0xff]  ;;  %v323_v62 = vld [vmem:[%s1513_s3 + $0x1e8] sm:$0xff]  ;;  %679 = vmatprep.subr.bf16.mxu1 %v678_v56  ;;  %v82_v8 = vld [vmem:[%s1511_s1 + $0x1d0] sm:$0xff] }
  0x32   :  { %627 = vmatprep.subr.bf16.mxu0 %v626_v47  ;;  %v81_v63 = vld [vmem:[%s1511_s1 + $0x1c8] sm:$0xff]  ;;  %v680_v1 = vpack.c.bf16 %v314_v58, %v310_v57  ;;  %v80_v3 = vld [vmem:[%s1511_s1 + $0x1c0] sm:$0xff]  ;;  %v682_v4 = vpack.c.bf16 %v323_v62, %v319_v61  ;;  %v87_v12 = vld [vmem:[%s1511_s1 + $0x1f8] sm:$0xff] }
  0x33   :  { %v318_v5 = vld [vmem:[%s1513_s3 + $0x1c0] sm:$0xff]  ;;  %v634_v7 = vpack.c.bf16 %v83_v0, %v81_v63  ;;  %v327_v9 = vld [vmem:[%s1513_s3 + $0x208] sm:$0xff]  ;;  %v636_v14 = vpack.c.bf16 %v82_v8, %v80_v3  ;;  %v86_v20 = vld [vmem:[%s1511_s1 + $0x1f0] sm:$0xff] }
  0x34   :  { %v322_v6 = vld [vmem:[%s1513_s3 + $0x1e0] sm:$0xff]  ;;  %v331_v10 = vld [vmem:[%s1513_s3 + $0x228] sm:$0xff]  ;;  %681 = vmatpush1.bf16.msra.mxu1 %v680_v1  ;;  %v91_v24 = vld [vmem:[%s1511_s1 + $0x218] sm:$0xff] }
  0x35   :  { %629 = vmatpush1.bf16.msra.mxu0 %v628_v54  ;;  %v85_v11 = vld [vmem:[%s1511_s1 + $0x1e8] sm:$0xff]  ;;  %v684_v13 = vpack.c.bf16 %v322_v6, %v318_v5  ;;  %v84_v15 = vld [vmem:[%s1511_s1 + $0x1e0] sm:$0xff]  ;;  %683 = vmatprep.subr.bf16.mxu1 %v682_v4  ;;  %v686_v16 = vpack.c.bf16 %v331_v10, %v327_v9  ;;  %v90_v32 = vld [vmem:[%s1511_s1 + $0x210] sm:$0xff] }
  0x36   :  { %631 = vmatprep.subr.bf16.mxu0 %v630_v59  ;;  %v326_v17 = vld [vmem:[%s1513_s3 + $0x200] sm:$0xff]  ;;  %v638_v19 = vpack.c.bf16 %v87_v12, %v85_v11  ;;  %v335_v21 = vld [vmem:[%s1513_s3 + $0x248] sm:$0xff]  ;;  %v640_v26 = vpack.c.bf16 %v86_v20, %v84_v15  ;;  %v95_v34 = vld [vmem:[%s1511_s1 + $0x238] sm:$0xff] }
  0x37   :  { %v330_v18 = vld [vmem:[%s1513_s3 + $0x220] sm:$0xff]  ;;  %v339_v22 = vld [vmem:[%s1513_s3 + $0x268] sm:$0xff]  ;;  %v94_v44 = vld [vmem:[%s1511_s1 + $0x230] sm:$0xff] }
  0x38   :  { %v89_v23 = vld [vmem:[%s1511_s1 + $0x208] sm:$0xff]  ;;  %685 = vmatpush1.bf16.msra.mxu1 %v684_v13  ;;  %v688_v25 = vpack.c.bf16 %v330_v18, %v326_v17  ;;  %v690_v27 = vpack.c.bf16 %v339_v22, %v335_v21  ;;  %v334_v28 = vld [vmem:[%s1513_s3 + $0x240] sm:$0xff]  ;;  %v99_v49 = vld [vmem:[%s1511_s1 + $0x258] sm:$0xff] }
  0x39   :  { %633 = vmatpush1.bf16.msra.mxu0 %v632_v2  ;;  %687 = vmatprep.subr.bf16.mxu1 %v686_v16  ;;  %v338_v29 = vld [vmem:[%s1513_s3 + $0x260] sm:$0xff]  ;;  %v642_v30 = vpack.c.bf16 %v91_v24, %v89_v23  ;;  %v93_v33 = vld [vmem:[%s1511_s1 + $0x228] sm:$0xff]  ;;  %v98_v58 = vld [vmem:[%s1511_s1 + $0x250] sm:$0xff] }
  0x3a   :  { %635 = vmatprep.subr.bf16.mxu0 %v634_v7  ;;  %v88_v31 = vld [vmem:[%s1511_s1 + $0x200] sm:$0xff]  ;;  %v343_v35 = vld [vmem:[%s1513_s3 + $0x288] sm:$0xff]  ;;  %v692_v38 = vpack.c.bf16 %v338_v29, %v334_v28  ;;  %v646_v43 = vpack.c.bf16 %v95_v34, %v93_v33  ;;  %v23_v12 = vld [vmem:[%s1510_s0 + $0x10] sm:$0xff] }
  0x3b   :  { %v347_v36 = vld [vmem:[%s1513_s3 + $0x2a8] sm:$0xff]  ;;  %v21_v37 = vld [vmem:[%s1510_s0] sm:$0xff]  ;;  %v644_v39 = vpack.c.bf16 %v90_v32, %v88_v31  ;;  %v265_v24 = vld [vmem:[%s1513_s3 + $0x18] sm:$0xff] }
  0x3c   :  { %689 = vmatpush1.bf16.msra.mxu1 %v688_v25  ;;  %v92_v40 = vld [vmem:[%s1511_s1 + $0x220] sm:$0xff]  ;;  %v694_v45 = vpack.c.bf16 %v347_v36, %v343_v35  ;;  %v351_v46 = vld [vmem:[%s1513_s3 + $0x2c8] sm:$0xff]  ;;  %v269_v25 = vld [vmem:[%s1513_s3 + $0x38] sm:$0xff] }
  0x3d   :  { %637 = vmatpush1.bf16.msra.mxu0 %v636_v14  ;;  %691 = vmatprep.subr.bf16.mxu1 %v690_v27  ;;  %v342_v41 = vld [vmem:[%s1513_s3 + $0x280] sm:$0xff]  ;;  %v355_v47 = vld [vmem:[%s1513_s3 + $0x2e8] sm:$0xff]  ;;  %v648_v51 = vpack.c.bf16 %v94_v44, %v92_v40  ;;  %v104_v27 = vlaneseq  ;;  %v273_v40 = vld [vmem:[%s1513_s3 + $0x58] sm:$0xff] }
  0x3e   :  { %639 = vmatprep.subr.bf16.mxu0 %v638_v19  ;;  %v346_v42 = vld [vmem:[%s1513_s3 + $0x2a0] sm:$0xff]  ;;  %v97_v48 = vld [vmem:[%s1511_s1 + $0x248] sm:$0xff]  ;;  %v698_v54 = vpack.c.bf16 %v355_v47, %v351_v46  ;;  %v272_v46 = vld [vmem:[%s1513_s3 + $0x50] sm:$0xff] }
  0x3f   :  { %v696_v50 = vpack.c.bf16 %v346_v42, %v342_v41  ;;  %v96_v52 = vld [vmem:[%s1511_s1 + $0x240] sm:$0xff]  ;;  %v650_v57 = vpack.c.bf16 %v99_v49, %v97_v48  ;;  %v359_v59 = vld [vmem:[%s1513_s3 + $0x308] sm:$0xff]  ;;  %v1285_v28 = vshrl.u32 %v104_v27, 7  ;;  %v277_v41 = vld [vmem:[%s1513_s3 + $0x78] sm:$0xff] }
  0x40   :  { %693 = vmatpush1.bf16.msra.mxu1 %v692_v38  ;;  %v350_v55 = vld [vmem:[%s1513_s3 + $0x2c0] sm:$0xff]  ;;  %v363_v60 = vld [vmem:[%s1513_s3 + $0x328] sm:$0xff]  ;;  %v652_v62 = vpack.c.bf16 %v98_v58, %v96_v52  ;;  %v268_v38 = vld [vmem:[%s1513_s3 + $0x30] sm:$0xff] }
  0x41   :  { %641 = vmatpush1.bf16.msra.mxu0 %v640_v26  ;;  %v354_v56 = vld [vmem:[%s1513_s3 + $0x2e0] sm:$0xff]  ;;  %695 = vmatprep.subr.bf16.mxu1 %v694_v45  ;;  %v702_v63 = vpack.c.bf16 %v363_v60, %v359_v59  ;;  %v367_v2 = vld [vmem:[%s1513_s3 + $0x348] sm:$0xff]  ;;  %v718_v26 = vpack.c.bf16 %v269_v25, %v265_v24  ;;  %v106_v29 = vsub.s32 0, %v1285_v28  ;;  %v110_v31 = vsub.s32 1, %v1285_v28  ;;  %v276_v47 = vld [vmem:[%s1513_s3 + $0x70] sm:$0xff] }
  0x42   :  { %643 = vmatprep.subr.bf16.mxu0 %v642_v30  ;;  %v700_v61 = vpack.c.bf16 %v354_v56, %v350_v55  ;;  %v358_v0 = vld [vmem:[%s1513_s3 + $0x300] sm:$0xff]  ;;  %v371_v3 = vld [vmem:[%s1513_s3 + $0x368] sm:$0xff]  ;;  %v722_v45 = vpack.c.bf16 %v277_v41, %v273_v40  ;;  %v281_v48 = vld [vmem:[%s1513_s3 + $0x98] sm:$0xff] }
  0x43   :  { %v362_v1 = vld [vmem:[%s1513_s3 + $0x320] sm:$0xff]  ;;  %v101_v4 = vld [vmem:[%s1511_s1 + $0x268] sm:$0xff]  ;;  %v706_v6 = vpack.c.bf16 %v371_v3, %v367_v2  ;;  %v285_v49 = vld [vmem:[%s1513_s3 + $0xb8] sm:$0xff] }
  0x44   :  { %183 = vmatmul.mubr.f32.vlgmr.msra.gmra.mrb[0].mxu0 %v21_v37  ;;  %697 = vmatpush1.bf16.msra.mxu1 %v696_v50  ;;  %v704_v5 = vpack.c.bf16 %v362_v1, %v358_v0  ;;  %v366_v7 = vld [vmem:[%s1513_s3 + $0x340] sm:$0xff]  ;;  %v375_v10 = vld [vmem:[%s1513_s3 + $0x388] sm:$0xff]  ;;  %v264_v37 = vld [vmem:[%s1513_s3 + $0x10] sm:$0xff]  ;;  %v724_v50 = vpack.c.bf16 %v276_v47, %v272_v46 }
  0x45   :  { %645 = vmatpush1.bf16.msra.mxu0 %v644_v39  ;;  %253 = vmatprep.mubr.f32.mxu0 %v812_v53  ;;  %v370_v8 = vld [vmem:[%s1513_s3 + $0x360] sm:$0xff]  ;;  %v379_v11 = vld [vmem:[%s1513_s3 + $0x3a8] sm:$0xff]  ;;  %v280_v52 = vld [vmem:[%s1513_s3 + $0x90] sm:$0xff] }
  0x46   :  { %647 = vmatprep.subr.bf16.mxu0 %v646_v43  ;;  %699 = vmatprep.subr.bf16.mxu1 %v698_v54  ;;  %v100_v9 = vld [vmem:[%s1511_s1 + $0x260] sm:$0xff]  ;;  %v708_v13 = vpack.c.bf16 %v370_v8, %v366_v7  ;;  %v710_v14 = vpack.c.bf16 %v379_v11, %v375_v10  ;;  %v383_v18 = vld [vmem:[%s1513_s3 + $0x3c8] sm:$0xff]  ;;  %v720_v43 = vpack.c.bf16 %v268_v38, %v264_v37  ;;  %v284_v53 = vld [vmem:[%s1513_s3 + $0xb0] sm:$0xff] }
  0x47   :  { %v374_v15 = vld [vmem:[%s1513_s3 + $0x380] sm:$0xff]  ;;  %v387_v19 = vld [vmem:[%s1513_s3 + $0x3e8] sm:$0xff]  ;;  %v289_v54 = vld [vmem:[%s1513_s3 + $0xd8] sm:$0xff]  ;;  %v728_v56 = vpack.c.bf16 %v284_v53, %v280_v52 }
  0x48   :  { %701 = vmatpush1.bf16.msra.mxu1 %v700_v61  ;;  %v378_v16 = vld [vmem:[%s1513_s3 + $0x3a0] sm:$0xff]  ;;  %v714_v20 = vpack.c.bf16 %v387_v19, %v383_v18  ;;  %v293_v55 = vld [vmem:[%s1513_s3 + $0xf8] sm:$0xff]  ;;  %v288_v58 = vld [vmem:[%s1513_s3 + $0xd0] sm:$0xff] }
  0x49   :  { %649 = vmatpush1.bf16.msra.mxu0 %v648_v51  ;;  %703 = vmatprep.subr.bf16.mxu1 %v702_v63  ;;  %v712_v17 = vpack.c.bf16 %v378_v16, %v374_v15  ;;  %v382_v21 = vld [vmem:[%s1513_s3 + $0x3c0] sm:$0xff]  ;;  %v726_v51 = vpack.c.bf16 %v285_v49, %v281_v48  ;;  %v292_v59 = vld [vmem:[%s1513_s3 + $0xf0] sm:$0xff]  ;;  %v297_v60 = vld [vmem:[%s1513_s3 + $0x118] sm:$0xff] }
  0x4a   :  { %651 = vmatprep.subr.bf16.mxu0 %v650_v57  ;;  %v386_v22 = vld [vmem:[%s1513_s3 + $0x3e0] sm:$0xff]  ;;  %v730_v57 = vpack.c.bf16 %v293_v55, %v289_v54  ;;  %v301_v61 = vld [vmem:[%s1513_s3 + $0x138] sm:$0xff]  ;;  %v296_v0 = vld [vmem:[%s1513_s3 + $0x110] sm:$0xff] }
  0x4b   :  { %v716_v23 = vpack.c.bf16 %v386_v22, %v382_v21  ;;  %v102_v30 = vld [vmem:[%s1512_s2] sm:$0x3]  ;;  %v734_v63 = vpack.c.bf16 %v301_v61, %v297_v60  ;;  %v300_v1 = vld [vmem:[%s1513_s3 + $0x130] sm:$0xff]  ;;  %v305_v2 = vld [vmem:[%s1513_s3 + $0x158] sm:$0xff] }
  0x4c   :  { %705 = vmatpush1.bf16.msra.mxu1 %v704_v5  ;;  %v107_v32 = vrot.slane %v102_v30, %v106_v29  ;;  %v111_v33 = vrot.slane %v102_v30, %v110_v31  ;;  %v309_v3 = vld [vmem:[%s1513_s3 + $0x178] sm:$0xff]  ;;  %v308_v7 = vld [vmem:[%s1513_s3 + $0x170] sm:$0xff] }
  0x4d   :  { %653 = vmatpush1.bf16.msra.mxu0 %v652_v62  ;;  %707 = vmatprep.subr.bf16.mxu1 %v706_v6  ;;  %v732_v62 = vpack.c.bf16 %v292_v59, %v288_v58  ;;  %v738_v5 = vpack.c.bf16 %v309_v3, %v305_v2  ;;  %v304_v6 = vld [vmem:[%s1513_s3 + $0x150] sm:$0xff]  ;;  %v313_v8 = vld [vmem:[%s1513_s3 + $0x198] sm:$0xff] }
  0x4e   :  { %201 = vmatprep.subr.mxu0 %v101_v4  ;;  %v736_v4 = vpack.c.bf16 %v300_v1, %v296_v0  ;;  %v740_v10 = vpack.c.bf16 %v308_v7, %v304_v6  ;;  %v325_v15 = vld [vmem:[%s1513_s3 + $0x1f8] sm:$0xff]  ;;  %v320_v18 = vld [vmem:[%s1513_s3 + $0x1d0] sm:$0xff] }
  0x4f   :  { %v324_v19 = vld [vmem:[%s1513_s3 + $0x1f0] sm:$0xff]  ;;  %v333_v21 = vld [vmem:[%s1513_s3 + $0x238] sm:$0xff] }
  0x50   :  { %709 = vmatpush1.bf16.msra.mxu1 %v708_v13  ;;  %v316_v13 = vld [vmem:[%s1513_s3 + $0x1b0] sm:$0xff]  ;;  %v748_v22 = vpack.c.bf16 %v324_v19, %v320_v18  ;;  %v341_v27 = vld [vmem:[%s1513_s3 + $0x278] sm:$0xff] }
  0x51   :  { %202 = vmatpush1.msra.mxu0 %v100_v9  ;;  %711 = vmatprep.subr.bf16.mxu1 %v710_v14  ;;  %v317_v9 = vld [vmem:[%s1513_s3 + $0x1b8] sm:$0xff]  ;;  %v328_v24 = vld [vmem:[%s1513_s3 + $0x210] sm:$0xff] }
  0x52   :  { %577 = vmatmul.mubr.msk.f32.vlgmr.msra.gmra.mrb[0].mxu0 %vm114_vm0, %v23_v12  ;;  %v742_v11 = vpack.c.bf16 %v317_v9, %v313_v8  ;;  %v312_v12 = vld [vmem:[%s1513_s3 + $0x190] sm:$0xff]  ;;  %v321_v14 = vld [vmem:[%s1513_s3 + $0x1d8] sm:$0xff] }
  0x53   :  { %v744_v16 = vpack.c.bf16 %v316_v13, %v312_v12  ;;  %v332_v25 = vld [vmem:[%s1513_s3 + $0x230] sm:$0xff]  ;;  %v349_v37 = vld [vmem:[%s1513_s3 + $0x2b8] sm:$0xff] }
  0x54   :  { %713 = vmatpush1.bf16.msra.mxu1 %v712_v17  ;;  %v746_v17 = vpack.c.bf16 %v325_v15, %v321_v14  ;;  %v752_v30 = vpack.c.bf16 %v332_v25, %v328_v24  ;;  %v344_v40 = vld [vmem:[%s1513_s3 + $0x290] sm:$0xff]  ;;  %v361_v49 = vld [vmem:[%s1513_s3 + $0x318] sm:$0xff] }
  0x55   :  { %715 = vmatprep.subr.bf16.mxu1 %v714_v20  ;;  %v329_v20 = vld [vmem:[%s1513_s3 + $0x218] sm:$0xff]  ;;  %v348_v41 = vld [vmem:[%s1513_s3 + $0x2b0] sm:$0xff] }
  0x56   :  { %v352_v47 = vld [vmem:[%s1513_s3 + $0x2d0] sm:$0xff]  ;;  %v369_v55 = vld [vmem:[%s1513_s3 + $0x358] sm:$0xff] }
  0x57   :  { %v356_v48 = vld [vmem:[%s1513_s3 + $0x2f0] sm:$0xff]  ;;  %v377_v61 = vld [vmem:[%s1513_s3 + $0x398] sm:$0xff] }
  0x58   :  { %717 = vmatpush1.bf16.msra.mxu1 %v716_v23  ;;  %v750_v23 = vpack.c.bf16 %v333_v21, %v329_v20  ;;  %v360_v53 = vld [vmem:[%s1513_s3 + $0x310] sm:$0xff]  ;;  %v385_v3 = vld [vmem:[%s1513_s3 + $0x3d8] sm:$0xff] }
  0x59   :  { %719 = vmatprep.subr.bf16.mxu1 %v718_v26  ;;  %v337_v26 = vld [vmem:[%s1513_s3 + $0x258] sm:$0xff]  ;;  %v364_v54 = vld [vmem:[%s1513_s3 + $0x330] sm:$0xff] }
  0x5a   :  { %v368_v59 = vld [vmem:[%s1513_s3 + $0x350] sm:$0xff] }
  0x5b   :  { %v372_v60 = vld [vmem:[%s1513_s3 + $0x370] sm:$0xff] }
  0x5c   :  { %v376_v1 = vld [vmem:[%s1513_s3 + $0x390] sm:$0xff] }
  0x5d   :  { %v380_v2 = vld [vmem:[%s1513_s3 + $0x3b0] sm:$0xff] }
  0x5e   :  { %v384_v7 = vld [vmem:[%s1513_s3 + $0x3d0] sm:$0xff] }
  0x5f   :  { %v388_v8 = vld [vmem:[%s1513_s3 + $0x3f0] sm:$0xff] }
  0x60   :  { %v780_v9 = vpack.c.bf16 %v388_v8, %v384_v7 }
 0x125   :  { %v255_v34 = vpop.f32.mrb[0].mxu0 }
 0x126   :  { %v1296_v35 = vadd.f32 %v255_v34, %v107_v32  ;;  %v257_v36 = vpop.f32.mrb[1].mxu0  ;;  %v754_v32 = vpack.c.bf16 %v341_v27, %v337_v26  ;;  %v340_v34 = vld [vmem:[%s1513_s3 + $0x270] sm:$0xff] }
 0x127   :  { %v783_v39 = vadd.f32 %v257_v36, %v111_v33  ;;  %v336_v33 = vld [vmem:[%s1513_s3 + $0x250] sm:$0xff]  ;;  %v345_v36 = vld [vmem:[%s1513_s3 + $0x298] sm:$0xff] }
 0x128   :  { %v260_v44 = vmax.f32 %v1296_v35, 0.0  ;;  %v756_v38 = vpack.c.bf16 %v340_v34, %v336_v33  ;;  %v402_v35 = vsub.s32 2, %v1285_v28 }
 0x129   :  { %v261_v42 = vmax.f32 %v783_v39, 0.0  ;;  %v758_v39 = vpack.c.bf16 %v349_v37, %v345_v36 }
 0x12b   :  { %476 = vmatprep.mubr.f32.mxu1 %v261_v42 }
 0x12c   :  { %477 = vmatmul.mubr.f32.vlgmr.msra.gmra.mrb[0].mxu1 %v260_v44 }
 0x12d   :  { %721 = vmatpush1.bf16.msra.mxu1 %v720_v43  ;;  %547 = vmatprep.mubr.f32.mxu1 %v261_v42  ;;  %v353_v42 = vld [vmem:[%s1513_s3 + $0x2d8] sm:$0xff] }
 0x12e   :  { %723 = vmatprep.subr.bf16.mxu1 %v722_v45  ;;  %v357_v43 = vld [vmem:[%s1513_s3 + $0x2f8] sm:$0xff]  ;;  %v760_v45 = vpack.c.bf16 %v348_v41, %v344_v40 }
 0x12f   :  { %v762_v46 = vpack.c.bf16 %v357_v43, %v353_v42 }
 0x131   :  { %725 = vmatpush1.bf16.msra.mxu1 %v724_v50  ;;  %v365_v50 = vld [vmem:[%s1513_s3 + $0x338] sm:$0xff] }
 0x132   :  { %727 = vmatprep.subr.bf16.mxu1 %v726_v51  ;;  %v764_v51 = vpack.c.bf16 %v356_v48, %v352_v47  ;;  %v766_v52 = vpack.c.bf16 %v365_v50, %v361_v49 }
 0x135   :  { %729 = vmatpush1.bf16.msra.mxu1 %v728_v56  ;;  %v373_v56 = vld [vmem:[%s1513_s3 + $0x378] sm:$0xff] }
 0x136   :  { %731 = vmatprep.subr.bf16.mxu1 %v730_v57  ;;  %v768_v57 = vpack.c.bf16 %v364_v54, %v360_v53  ;;  %v770_v58 = vpack.c.bf16 %v373_v56, %v369_v55 }
 0x139   :  { %733 = vmatpush1.bf16.msra.mxu1 %v732_v62  ;;  %v381_v62 = vld [vmem:[%s1513_s3 + $0x3b8] sm:$0xff] }
 0x13a   :  { %735 = vmatprep.subr.bf16.mxu1 %v734_v63  ;;  %v772_v63 = vpack.c.bf16 %v372_v60, %v368_v59  ;;  %v774_v0 = vpack.c.bf16 %v381_v62, %v377_v61 }
 0x13d   :  { %737 = vmatpush1.bf16.msra.mxu1 %v736_v4  ;;  %v389_v4 = vld [vmem:[%s1513_s3 + $0x3f8] sm:$0xff]  ;;  %s813_s3 = smov [#allocation2]  }
 0x13e   :  { %739 = vmatprep.subr.bf16.mxu1 %v738_v5  ;;  %v776_v5 = vpack.c.bf16 %v380_v2, %v376_v1  ;;  %v778_v6 = vpack.c.bf16 %v389_v4, %v385_v3 }
 0x141   :  { %741 = vmatpush1.bf16.msra.mxu1 %v740_v10  ;;  %v390_v10 = vld [vmem:[%s1514_s4] sm:$0xf]  ;;  %s569_s4 = sshll.u32 %s813_s3, 4  ;;  %s570_s4 = int_to_ptr.vmem [resolvable:$true] %s569_s4 }
 0x142   :  { %743 = vmatprep.subr.bf16.mxu1 %v742_v11  ;;  %v395_v11 = vrot.slane %v390_v10, %v106_v29  ;;  %v399_v12 = vrot.slane %v390_v10, %v110_v31  ;;  %v403_v19 = vrot.slane %v390_v10, %v402_v35  ;;  %s788_s0 = scalar_lea.vmem %s570_s4, 512  ;;  %p793_p1 = scmp.lt.s32.totalorder %s570_s4, %s570_s4 }
 0x143   :  { %p789_p0 = scmp.ne.s32.totalorder %s570_s4, %s788_s0  ;;  %p794_p2 = scmp.lt.s32.totalorder %s788_s0, %s788_s0 }
 0x145   :  { %745 = vmatpush1.bf16.msra.mxu1 %v744_v16  ;;  %p795_p3 = por %p794_p2, %p793_p1 }
 0x146   :  { %747 = vmatprep.subr.bf16.mxu1 %v746_v17 }
 0x147   :  { %p796_p4 = pnand %p795_p3, %p789_p0 }
 0x149   :  { %749 = vmatpush1.bf16.msra.mxu1 %v748_v22 }
 0x14a   :  { %751 = vmatprep.subr.bf16.mxu1 %v750_v23 }
 0x14d   :  { %753 = vmatpush1.bf16.msra.mxu1 %v752_v30 }
 0x14e   :  { %755 = vmatprep.subr.bf16.mxu1 %v754_v32 }
 0x151   :  { %757 = vmatpush1.bf16.msra.mxu1 %v756_v38 }
 0x152   :  { %759 = vmatprep.subr.bf16.mxu1 %v758_v39 }
 0x155   :  { %761 = vmatpush1.bf16.msra.mxu1 %v760_v45 }
 0x156   :  { %763 = vmatprep.subr.bf16.mxu1 %v762_v46 }
 0x159   :  { %765 = vmatpush1.bf16.msra.mxu1 %v764_v51 }
 0x15a   :  { %767 = vmatprep.subr.bf16.mxu1 %v766_v52 }
 0x15d   :  { %769 = vmatpush1.bf16.msra.mxu1 %v768_v57 }
 0x15e   :  { %771 = vmatprep.subr.bf16.mxu1 %v770_v58 }
 0x161   :  { %773 = vmatpush1.bf16.msra.mxu1 %v772_v63 }
 0x162   :  { %775 = vmatprep.subr.bf16.mxu1 %v774_v0 }
 0x165   :  { %777 = vmatpush1.bf16.msra.mxu1 %v776_v5 }
 0x166   :  { %779 = vmatprep.subr.bf16.mxu1 %v778_v6 }
 0x169   :  { %781 = vmatpush1.bf16.msra.mxu1 %v780_v9 }
 0x16c   :  { %548 = vmatmul.mubr.f32.vlgmr.msra.gmra.mrb[2].mxu1 %v260_v44  ;;  %v406_v44 = vsub.s32 3, %v1285_v28 }
 0x16e   :  { %v407_v20 = vrot.slane %v390_v10, %v406_v44 }
 0x1ff   :  { %v478_v13 = vpop.f32.mrb[0].mxu1 }
 0x200   :  { %v479_v14 = vadd.f32 %v478_v13, %v395_v11  ;;  %v480_v15 = vpop.f32.mrb[1].mxu1 }
 0x201   :  { %v481_v16 = vadd.f32 %v480_v15, %v399_v12 }
 0x202   :  { %v554_v17 = vmax.f32 %v479_v14, 0.0 }
 0x203   :  { %v555_v18 = vmax.f32 %v481_v16, 0.0 }
 0x204   :  { %558 = vst [vmem:[#allocation2] sm:$0xff] %v554_v17 }
 0x205   :  { %559 = vst [vmem:[#allocation2 + $0x8] sm:$0xff] %v555_v18 }
 0x23f   :  { %v549_v21 = vpop.f32.mrb[2].mxu1 }
 0x240   :  { %v550_v22 = vadd.f32 %v549_v21, %v403_v19  ;;  %v551_v29 = vpop.f32.mrb[3].mxu1 }
 0x241   :  { %v552_v31 = vadd.f32 %v551_v29, %v407_v20 }
 0x242   :  { %v556_v23 = vmax.f32 %v550_v22, 0.0 }
 0x243   :  { %v557_v24 = vmax.f32 %v552_v31, 0.0 }
 0x244   :  { %560 = vst [vmem:[#allocation2 + $0x10] sm:$0xff] %v556_v23 }
 0x245   :  { %562 = vst.msk [vmem:[#allocation2 + $0x18] sm:$0xff] %vm561_vm1, %v557_v24 }
 0x246   :  { %799 = shalt.err (!%p796_p4)
}
 0x247   :  { %s800_s26 = scalar_lea.hbm %s1515_s5, 512 }
 0x248   :  { %p801_p5 = scmp.ne.s32.totalorder %s1515_s5, %s800_s26  ;;  %p804_p6 = scmp.lt.u32.totalorder %s800_s26, %s1515_s5 }
 0x24a   :  { %p806_p7 = pnand %p804_p6, %p801_p5 }
 0x24c   :  { %809 = shalt.err (!%p806_p7)
}
 0x24d   :  { %572 = dma.vmem_to_hbm [thread:$0]  %s570_s4, 512, %s1515_s5, [#allocation3]  }
 0x24e   :  { %810 = dma.done.wait [#allocation3], 512  }
 0x24f   :  { %811 = vsyncadd [#allocation3], 4294966784 }
 0x250   :  { %576 = vsyncpa [#allocation3], 1 }

// kernel: tpu_custom_call.1
= control target key start
LH: loop header
LB: loop body
LE: loop exit
PB: predicated region body
PF: predicated region fallthrough
CT: control target
= control target key end

     0   :  { %s1510_s0 = inlined_call_operand.vmem [shape: f32[8,312], index: 0, kind: input, shape index: {}]   ;;  %s1511_s1 = inlined_call_operand.vmem [shape: f32[312,256], index: 1, kind: input, shape index: {}]   ;;  %s1512_s2 = inlined_call_operand.vmem [shape: f32[1,256], index: 2, kind: input, shape index: {}]   ;;  %s1513_s3 = inlined_call_operand.vmem [shape: f32[256,500], index: 3, kind: input, shape index: {}]   ;;  %s1514_s4 = inlined_call_operand.vmem [shape: f32[1,500], index: 4, kind: input, shape index: {}]   ;;  %s1515_s5 = inlined_call_operand.hbm [shape: f32[8,500], index: 5, kind: output, shape index: {}]  }
   0x1   :  { %v25_v0 = vld [vmem:[%s1511_s1 + $0x8] sm:$0xff]  ;;  %v27_v1 = vld [vmem:[%s1511_s1 + $0x18] sm:$0xff]  ;;  %v24_v2 = vld [vmem:[%s1511_s1] sm:$0xff] }
   0x2   :  { %v578_v3 = vpack.c.bf16 %v27_v1, %v25_v0  ;;  %v26_v4 = vld [vmem:[%s1511_s1 + $0x10] sm:$0xff]  ;;  %v29_v5 = vld [vmem:[%s1511_s1 + $0x28] sm:$0xff]  ;;  %v31_v6 = vld [vmem:[%s1511_s1 + $0x38] sm:$0xff] }
   0x3   :  { %v580_v7 = vpack.c.bf16 %v26_v4, %v24_v2  ;;  %v582_v8 = vpack.c.bf16 %v31_v6, %v29_v5  ;;  %v28_v9 = vld [vmem:[%s1511_s1 + $0x20] sm:$0xff]  ;;  %v30_v10 = vld [vmem:[%s1511_s1 + $0x30] sm:$0xff]  ;;  %v33_v11 = vld [vmem:[%s1511_s1 + $0x48] sm:$0xff] }
   0x4   :  { %579 = vmatprep.subr.bf16.mxu0 %v578_v3  ;;  %v35_v12 = vld [vmem:[%s1511_s1 + $0x58] sm:$0xff]  ;;  %v584_v13 = vpack.c.bf16 %v30_v10, %v28_v9  ;;  %v32_v15 = vld [vmem:[%s1511_s1 + $0x40] sm:$0xff]  ;;  %v34_v16 = vld [vmem:[%s1511_s1 + $0x50] sm:$0xff] }
   0x5   :  { %581 = vmatpush1.bf16.msra.mxu0 %v580_v7  ;;  %v586_v14 = vpack.c.bf16 %v35_v12, %v33_v11  ;;  %v37_v17 = vld [vmem:[%s1511_s1 + $0x68] sm:$0xff]  ;;  %v39_v18 = vld [vmem:[%s1511_s1 + $0x78] sm:$0xff]  ;;  %v588_v19 = vpack.c.bf16 %v34_v16, %v32_v15  ;;  %v36_v21 = vld [vmem:[%s1511_s1 + $0x60] sm:$0xff] }
   0x6   :  { %583 = vmatprep.subr.bf16.mxu0 %v582_v8  ;;  %v590_v20 = vpack.c.bf16 %v39_v18, %v37_v17  ;;  %v38_v22 = vld [vmem:[%s1511_s1 + $0x70] sm:$0xff]  ;;  %v41_v23 = vld [vmem:[%s1511_s1 + $0x88] sm:$0xff]  ;;  %v43_v24 = vld [vmem:[%s1511_s1 + $0x98] sm:$0xff] }
   0x7   :  { %v592_v25 = vpack.c.bf16 %v38_v22, %v36_v21  ;;  %v594_v26 = vpack.c.bf16 %v43_v24, %v41_v23  ;;  %v40_v27 = vld [vmem:[%s1511_s1 + $0x80] sm:$0xff]  ;;  %v42_v28 = vld [vmem:[%s1511_s1 + $0x90] sm:$0xff]  ;;  %v45_v29 = vld [vmem:[%s1511_s1 + $0xa8] sm:$0xff] }
   0x8   :  { %v47_v30 = vld [vmem:[%s1511_s1 + $0xb8] sm:$0xff]  ;;  %v596_v31 = vpack.c.bf16 %v42_v28, %v40_v27  ;;  %v44_v33 = vld [vmem:[%s1511_s1 + $0xa0] sm:$0xff]  ;;  %v46_v34 = vld [vmem:[%s1511_s1 + $0xb0] sm:$0xff] }
   0x9   :  { %585 = vmatpush1.bf16.msra.mxu0 %v584_v13  ;;  %v598_v32 = vpack.c.bf16 %v47_v30, %v45_v29  ;;  %v49_v35 = vld [vmem:[%s1511_s1 + $0xc8] sm:$0xff]  ;;  %v51_v36 = vld [vmem:[%s1511_s1 + $0xd8] sm:$0xff]  ;;  %v600_v37 = vpack.c.bf16 %v46_v34, %v44_v33  ;;  %v48_v39 = vld [vmem:[%s1511_s1 + $0xc0] sm:$0xff] }
   0xa   :  { %587 = vmatprep.subr.bf16.mxu0 %v586_v14  ;;  %v602_v38 = vpack.c.bf16 %v51_v36, %v49_v35  ;;  %v50_v40 = vld [vmem:[%s1511_s1 + $0xd0] sm:$0xff]  ;;  %v22_v41 = vld [vmem:[%s1510_s0 + $0x8] sm:$0xff]  ;;  %v55_v43 = vld [vmem:[%s1511_s1 + $0xf8] sm:$0xff] }
   0xb   :  { %v53_v42 = vld [vmem:[%s1511_s1 + $0xe8] sm:$0xff]  ;;  %182 = vmatprep.mubr.f32.mxu0 %v22_v41  ;;  %v604_v44 = vpack.c.bf16 %v50_v40, %v48_v39  ;;  %v52_v46 = vld [vmem:[%s1511_s1 + $0xe0] sm:$0xff]  ;;  %v54_v47 = vld [vmem:[%s1511_s1 + $0xf0] sm:$0xff] }
   0xc   :  { %v606_v45 = vpack.c.bf16 %v55_v43, %v53_v42  ;;  %v57_v48 = vld [vmem:[%s1511_s1 + $0x108] sm:$0xff]  ;;  %v59_v49 = vld [vmem:[%s1511_s1 + $0x118] sm:$0xff]  ;;  %v56_v50 = vld [vmem:[%s1511_s1 + $0x100] sm:$0xff]  ;;  %v608_v55 = vpack.c.bf16 %v54_v47, %v52_v46 }
   0xd   :  { %589 = vmatpush1.bf16.msra.mxu0 %v588_v19  ;;  %v58_v51 = vld [vmem:[%s1511_s1 + $0x110] sm:$0xff]  ;;  %v263_v52 = vld [vmem:[%s1513_s3 + $0x8] sm:$0xff]  ;;  %v262_v54 = vld [vmem:[%s1513_s3] sm:$0xff]  ;;  %v610_v60 = vpack.c.bf16 %v59_v49, %v57_v48 }
   0xe   :  { %591 = vmatprep.subr.bf16.mxu0 %v590_v20  ;;  %v267_v53 = vld [vmem:[%s1513_s3 + $0x28] sm:$0xff]  ;;  %v266_v57 = vld [vmem:[%s1513_s3 + $0x20] sm:$0xff]  ;;  %v63_v3 = vld [vmem:[%s1511_s1 + $0x138] sm:$0xff]  ;;  %v612_v6 = vpack.c.bf16 %v58_v51, %v56_v50 }
   0xf   :  { %v654_v56 = vpack.c.bf16 %v267_v53, %v263_v52  ;;  %v271_v58 = vld [vmem:[%s1513_s3 + $0x48] sm:$0xff]  ;;  %v656_v61 = vpack.c.bf16 %v266_v57, %v262_v54  ;;  %v270_v63 = vld [vmem:[%s1513_s3 + $0x40] sm:$0xff]  ;;  %v62_v12 = vld [vmem:[%s1511_s1 + $0x130] sm:$0xff] }
  0x10   :  { %v275_v59 = vld [vmem:[%s1513_s3 + $0x68] sm:$0xff]  ;;  %v274_v0 = vld [vmem:[%s1513_s3 + $0x60] sm:$0xff]  ;;  %v67_v16 = vld [vmem:[%s1511_s1 + $0x158] sm:$0xff] }
  0x11   :  { %593 = vmatpush1.bf16.msra.mxu0 %v592_v25  ;;  %v658_v62 = vpack.c.bf16 %v275_v59, %v271_v58  ;;  %v279_v1 = vld [vmem:[%s1513_s3 + $0x88] sm:$0xff]  ;;  %655 = vmatprep.subr.bf16.mxu1 %v654_v56  ;;  %v660_v5 = vpack.c.bf16 %v274_v0, %v270_v63  ;;  %v60_v7 = vld [vmem:[%s1511_s1 + $0x120] sm:$0xff]  ;;  %v66_v24 = vld [vmem:[%s1511_s1 + $0x150] sm:$0xff] }
  0x12   :  { %595 = vmatprep.subr.bf16.mxu0 %v594_v26  ;;  %v61_v2 = vld [vmem:[%s1511_s1 + $0x128] sm:$0xff]  ;;  %657 = vmatpush1.bf16.msra.mxu1 %v656_v61  ;;  %v278_v9 = vld [vmem:[%s1513_s3 + $0x80] sm:$0xff]  ;;  %v616_v18 = vpack.c.bf16 %v62_v12, %v60_v7  ;;  %v71_v28 = vld [vmem:[%s1511_s1 + $0x178] sm:$0xff] }
  0x13   :  { %v283_v4 = vld [vmem:[%s1513_s3 + $0xa8] sm:$0xff]  ;;  %659 = vmatprep.subr.bf16.mxu1 %v658_v62  ;;  %v282_v10 = vld [vmem:[%s1513_s3 + $0xa0] sm:$0xff]  ;;  %v614_v11 = vpack.c.bf16 %v63_v3, %v61_v2  ;;  %v70_v36 = vld [vmem:[%s1511_s1 + $0x170] sm:$0xff] }
  0x14   :  { %v662_v8 = vpack.c.bf16 %v283_v4, %v279_v1  ;;  %v287_v13 = vld [vmem:[%s1513_s3 + $0xc8] sm:$0xff]  ;;  %v664_v17 = vpack.c.bf16 %v282_v10, %v278_v9  ;;  %v64_v19 = vld [vmem:[%s1511_s1 + $0x140] sm:$0xff]  ;;  %v75_v40 = vld [vmem:[%s1511_s1 + $0x198] sm:$0xff] }
  0x15   :  { %597 = vmatpush1.bf16.msra.mxu0 %v596_v31  ;;  %v291_v14 = vld [vmem:[%s1513_s3 + $0xe8] sm:$0xff]  ;;  %v286_v21 = vld [vmem:[%s1513_s3 + $0xc0] sm:$0xff]  ;;  %v620_v30 = vpack.c.bf16 %v66_v24, %v64_v19  ;;  %v74_v48 = vld [vmem:[%s1511_s1 + $0x190] sm:$0xff] }
  0x16   :  { %599 = vmatprep.subr.bf16.mxu0 %v598_v32  ;;  %v65_v15 = vld [vmem:[%s1511_s1 + $0x148] sm:$0xff]  ;;  %661 = vmatpush1.bf16.msra.mxu1 %v660_v5  ;;  %v666_v20 = vpack.c.bf16 %v291_v14, %v287_v13  ;;  %v290_v22 = vld [vmem:[%s1513_s3 + $0xe0] sm:$0xff]  ;;  %v79_v52 = vld [vmem:[%s1511_s1 + $0x1b8] sm:$0xff] }
  0x17   :  { %663 = vmatprep.subr.bf16.mxu1 %v662_v8  ;;  %v618_v23 = vpack.c.bf16 %v67_v16, %v65_v15  ;;  %v295_v25 = vld [vmem:[%s1513_s3 + $0x108] sm:$0xff]  ;;  %v668_v29 = vpack.c.bf16 %v290_v22, %v286_v21  ;;  %v68_v31 = vld [vmem:[%s1511_s1 + $0x160] sm:$0xff] }
  0x18   :  { %v299_v26 = vld [vmem:[%s1513_s3 + $0x128] sm:$0xff]  ;;  %v294_v33 = vld [vmem:[%s1513_s3 + $0x100] sm:$0xff]  ;;  %v624_v42 = vpack.c.bf16 %v70_v36, %v68_v31 }
  0x19   :  { %601 = vmatpush1.bf16.msra.mxu0 %v600_v37  ;;  %v69_v27 = vld [vmem:[%s1511_s1 + $0x168] sm:$0xff]  ;;  %v670_v32 = vpack.c.bf16 %v299_v26, %v295_v25  ;;  %v298_v34 = vld [vmem:[%s1513_s3 + $0x120] sm:$0xff] }
  0x1a   :  { %603 = vmatprep.subr.bf16.mxu0 %v602_v38  ;;  %665 = vmatpush1.bf16.msra.mxu1 %v664_v17  ;;  %v622_v35 = vpack.c.bf16 %v71_v28, %v69_v27  ;;  %v303_v37 = vld [vmem:[%s1513_s3 + $0x148] sm:$0xff]  ;;  %v672_v41 = vpack.c.bf16 %v298_v34, %v294_v33  ;;  %v72_v43 = vld [vmem:[%s1511_s1 + $0x180] sm:$0xff] }
  0x1b   :  { %667 = vmatprep.subr.bf16.mxu1 %v666_v20  ;;  %v307_v38 = vld [vmem:[%s1513_s3 + $0x168] sm:$0xff]  ;;  %v306_v46 = vld [vmem:[%s1513_s3 + $0x160] sm:$0xff] }
  0x1c   :  { %v73_v39 = vld [vmem:[%s1511_s1 + $0x188] sm:$0xff] }
  0x1d   :  { %605 = vmatpush1.bf16.msra.mxu0 %v604_v44  ;;  %v674_v44 = vpack.c.bf16 %v307_v38, %v303_v37  ;;  %v626_v47 = vpack.c.bf16 %v75_v40, %v73_v39  ;;  %v311_v49 = vld [vmem:[%s1513_s3 + $0x188] sm:$0xff] }
  0x1e   :  { %607 = vmatprep.subr.bf16.mxu0 %v606_v45  ;;  %669 = vmatpush1.bf16.msra.mxu1 %v668_v29  ;;  %v302_v45 = vld [vmem:[%s1513_s3 + $0x140] sm:$0xff]  ;;  %v315_v50 = vld [vmem:[%s1513_s3 + $0x1a8] sm:$0xff] }
  0x1f   :  { %671 = vmatprep.subr.bf16.mxu1 %v670_v32  ;;  %v77_v51 = vld [vmem:[%s1511_s1 + $0x1a8] sm:$0xff]  ;;  %v676_v53 = vpack.c.bf16 %v306_v46, %v302_v45 }
  0x21   :  { %609 = vmatpush1.bf16.msra.mxu0 %v608_v55 }
  0x22   :  { %611 = vmatprep.subr.bf16.mxu0 %v610_v60  ;;  %673 = vmatpush1.bf16.msra.mxu1 %v672_v41 }
  0x25   :  { %613 = vmatpush1.bf16.msra.mxu0 %v612_v6 }
  0x26   :  { %615 = vmatprep.subr.bf16.mxu0 %v614_v11 }
  0x29   :  { %617 = vmatpush1.bf16.msra.mxu0 %v616_v18 }
  0x2a   :  { %619 = vmatprep.subr.bf16.mxu0 %v618_v23 }
  0x2d   :  { %621 = vmatpush1.bf16.msra.mxu0 %v620_v30 }
  0x2e   :  { %623 = vmatprep.subr.bf16.mxu0 %v622_v35 }
  0x2f   :  { %10 = vsyncpa [#allocation3], 0  ;;  %v628_v54 = vpack.c.bf16 %v74_v48, %v72_v43  ;;  %v76_v55 = vld [vmem:[%s1511_s1 + $0x1a0] sm:$0xff]  ;;  %675 = vmatprep.subr.bf16.mxu1 %v674_v44  ;;  %v678_v56 = vpack.c.bf16 %v315_v50, %v311_v49  ;;  %v630_v59 = vpack.c.bf16 %v79_v52, %v77_v51  ;;  %v78_v60 = vld [vmem:[%s1511_s1 + $0x1b0] sm:$0xff]  ;;  %vm114_vm0 = vcmask 457728  }
  0x30   :  { %v310_v57 = vld [vmem:[%s1513_s3 + $0x180] sm:$0xff]  ;;  %v319_v61 = vld [vmem:[%s1513_s3 + $0x1c8] sm:$0xff]  ;;  %v83_v0 = vld [vmem:[%s1511_s1 + $0x1d8] sm:$0xff]  ;;  %677 = vmatpush1.bf16.msra.mxu1 %v676_v53  ;;  %v632_v2 = vpack.c.bf16 %v78_v60, %v76_v55  ;;  %v812_v53 = vmov 0.0   ;;  %vm561_vm1 = vcmask 949248  }
  0x31   :  { %625 = vmatpush1.bf16.msra.mxu0 %v624_v42  ;;  %v314_v58 = vld [vmem:[%s1513_s3 + $0x1a0] sm:$0xff]  ;;  %v323_v62 = vld [vmem:[%s1513_s3 + $0x1e8] sm:$0xff]  ;;  %679 = vmatprep.subr.bf16.mxu1 %v678_v56  ;;  %v82_v8 = vld [vmem:[%s1511_s1 + $0x1d0] sm:$0xff] }
  0x32   :  { %627 = vmatprep.subr.bf16.mxu0 %v626_v47  ;;  %v81_v63 = vld [vmem:[%s1511_s1 + $0x1c8] sm:$0xff]  ;;  %v680_v1 = vpack.c.bf16 %v314_v58, %v310_v57  ;;  %v80_v3 = vld [vmem:[%s1511_s1 + $0x1c0] sm:$0xff]  ;;  %v682_v4 = vpack.c.bf16 %v323_v62, %v319_v61  ;;  %v87_v12 = vld [vmem:[%s1511_s1 + $0x1f8] sm:$0xff] }
  0x33   :  { %v318_v5 = vld [vmem:[%s1513_s3 + $0x1c0] sm:$0xff]  ;;  %v634_v7 = vpack.c.bf16 %v83_v0, %v81_v63  ;;  %v327_v9 = vld [vmem:[%s1513_s3 + $0x208] sm:$0xff]  ;;  %v636_v14 = vpack.c.bf16 %v82_v8, %v80_v3  ;;  %v86_v20 = vld [vmem:[%s1511_s1 + $0x1f0] sm:$0xff] }
  0x34   :  { %v322_v6 = vld [vmem:[%s1513_s3 + $0x1e0] sm:$0xff]  ;;  %v331_v10 = vld [vmem:[%s1513_s3 + $0x228] sm:$0xff]  ;;  %681 = vmatpush1.bf16.msra.mxu1 %v680_v1  ;;  %v91_v24 = vld [vmem:[%s1511_s1 + $0x218] sm:$0xff] }
  0x35   :  { %629 = vmatpush1.bf16.msra.mxu0 %v628_v54  ;;  %v85_v11 = vld [vmem:[%s1511_s1 + $0x1e8] sm:$0xff]  ;;  %v684_v13 = vpack.c.bf16 %v322_v6, %v318_v5  ;;  %v84_v15 = vld [vmem:[%s1511_s1 + $0x1e0] sm:$0xff]  ;;  %683 = vmatprep.subr.bf16.mxu1 %v682_v4  ;;  %v686_v16 = vpack.c.bf16 %v331_v10, %v327_v9  ;;  %v90_v32 = vld [vmem:[%s1511_s1 + $0x210] sm:$0xff] }
  0x36   :  { %631 = vmatprep.subr.bf16.mxu0 %v630_v59  ;;  %v326_v17 = vld [vmem:[%s1513_s3 + $0x200] sm:$0xff]  ;;  %v638_v19 = vpack.c.bf16 %v87_v12, %v85_v11  ;;  %v335_v21 = vld [vmem:[%s1513_s3 + $0x248] sm:$0xff]  ;;  %v640_v26 = vpack.c.bf16 %v86_v20, %v84_v15  ;;  %v95_v34 = vld [vmem:[%s1511_s1 + $0x238] sm:$0xff] }
  0x37   :  { %v330_v18 = vld [vmem:[%s1513_s3 + $0x220] sm:$0xff]  ;;  %v339_v22 = vld [vmem:[%s1513_s3 + $0x268] sm:$0xff]  ;;  %v94_v44 = vld [vmem:[%s1511_s1 + $0x230] sm:$0xff] }
  0x38   :  { %v89_v23 = vld [vmem:[%s1511_s1 + $0x208] sm:$0xff]  ;;  %685 = vmatpush1.bf16.msra.mxu1 %v684_v13  ;;  %v688_v25 = vpack.c.bf16 %v330_v18, %v326_v17  ;;  %v690_v27 = vpack.c.bf16 %v339_v22, %v335_v21  ;;  %v334_v28 = vld [vmem:[%s1513_s3 + $0x240] sm:$0xff]  ;;  %v99_v49 = vld [vmem:[%s1511_s1 + $0x258] sm:$0xff] }
  0x39   :  { %633 = vmatpush1.bf16.msra.mxu0 %v632_v2  ;;  %687 = vmatprep.subr.bf16.mxu1 %v686_v16  ;;  %v338_v29 = vld [vmem:[%s1513_s3 + $0x260] sm:$0xff]  ;;  %v642_v30 = vpack.c.bf16 %v91_v24, %v89_v23  ;;  %v93_v33 = vld [vmem:[%s1511_s1 + $0x228] sm:$0xff]  ;;  %v98_v58 = vld [vmem:[%s1511_s1 + $0x250] sm:$0xff] }
  0x3a   :  { %635 = vmatprep.subr.bf16.mxu0 %v634_v7  ;;  %v88_v31 = vld [vmem:[%s1511_s1 + $0x200] sm:$0xff]  ;;  %v343_v35 = vld [vmem:[%s1513_s3 + $0x288] sm:$0xff]  ;;  %v692_v38 = vpack.c.bf16 %v338_v29, %v334_v28  ;;  %v646_v43 = vpack.c.bf16 %v95_v34, %v93_v33  ;;  %v23_v12 = vld [vmem:[%s1510_s0 + $0x10] sm:$0xff] }
  0x3b   :  { %v347_v36 = vld [vmem:[%s1513_s3 + $0x2a8] sm:$0xff]  ;;  %v21_v37 = vld [vmem:[%s1510_s0] sm:$0xff]  ;;  %v644_v39 = vpack.c.bf16 %v90_v32, %v88_v31  ;;  %v265_v24 = vld [vmem:[%s1513_s3 + $0x18] sm:$0xff] }
  0x3c   :  { %689 = vmatpush1.bf16.msra.mxu1 %v688_v25  ;;  %v92_v40 = vld [vmem:[%s1511_s1 + $0x220] sm:$0xff]  ;;  %v694_v45 = vpack.c.bf16 %v347_v36, %v343_v35  ;;  %v351_v46 = vld [vmem:[%s1513_s3 + $0x2c8] sm:$0xff]  ;;  %v269_v25 = vld [vmem:[%s1513_s3 + $0x38] sm:$0xff] }
  0x3d   :  { %637 = vmatpush1.bf16.msra.mxu0 %v636_v14  ;;  %691 = vmatprep.subr.bf16.mxu1 %v690_v27  ;;  %v342_v41 = vld [vmem:[%s1513_s3 + $0x280] sm:$0xff]  ;;  %v355_v47 = vld [vmem:[%s1513_s3 + $0x2e8] sm:$0xff]  ;;  %v648_v51 = vpack.c.bf16 %v94_v44, %v92_v40  ;;  %v104_v27 = vlaneseq  ;;  %v273_v40 = vld [vmem:[%s1513_s3 + $0x58] sm:$0xff] }
  0x3e   :  { %639 = vmatprep.subr.bf16.mxu0 %v638_v19  ;;  %v346_v42 = vld [vmem:[%s1513_s3 + $0x2a0] sm:$0xff]  ;;  %v97_v48 = vld [vmem:[%s1511_s1 + $0x248] sm:$0xff]  ;;  %v698_v54 = vpack.c.bf16 %v355_v47, %v351_v46  ;;  %v272_v46 = vld [vmem:[%s1513_s3 + $0x50] sm:$0xff] }
  0x3f   :  { %v696_v50 = vpack.c.bf16 %v346_v42, %v342_v41  ;;  %v96_v52 = vld [vmem:[%s1511_s1 + $0x240] sm:$0xff]  ;;  %v650_v57 = vpack.c.bf16 %v99_v49, %v97_v48  ;;  %v359_v59 = vld [vmem:[%s1513_s3 + $0x308] sm:$0xff]  ;;  %v1285_v28 = vshrl.u32 %v104_v27, 7  ;;  %v277_v41 = vld [vmem:[%s1513_s3 + $0x78] sm:$0xff] }
  0x40   :  { %693 = vmatpush1.bf16.msra.mxu1 %v692_v38  ;;  %v350_v55 = vld [vmem:[%s1513_s3 + $0x2c0] sm:$0xff]  ;;  %v363_v60 = vld [vmem:[%s1513_s3 + $0x328] sm:$0xff]  ;;  %v652_v62 = vpack.c.bf16 %v98_v58, %v96_v52  ;;  %v268_v38 = vld [vmem:[%s1513_s3 + $0x30] sm:$0xff] }
  0x41   :  { %641 = vmatpush1.bf16.msra.mxu0 %v640_v26  ;;  %v354_v56 = vld [vmem:[%s1513_s3 + $0x2e0] sm:$0xff]  ;;  %695 = vmatprep.subr.bf16.mxu1 %v694_v45  ;;  %v702_v63 = vpack.c.bf16 %v363_v60, %v359_v59  ;;  %v367_v2 = vld [vmem:[%s1513_s3 + $0x348] sm:$0xff]  ;;  %v718_v26 = vpack.c.bf16 %v269_v25, %v265_v24  ;;  %v106_v29 = vsub.s32 0, %v1285_v28  ;;  %v110_v31 = vsub.s32 1, %v1285_v28  ;;  %v276_v47 = vld [vmem:[%s1513_s3 + $0x70] sm:$0xff] }
  0x42   :  { %643 = vmatprep.subr.bf16.mxu0 %v642_v30  ;;  %v700_v61 = vpack.c.bf16 %v354_v56, %v350_v55  ;;  %v358_v0 = vld [vmem:[%s1513_s3 + $0x300] sm:$0xff]  ;;  %v371_v3 = vld [vmem:[%s1513_s3 + $0x368] sm:$0xff]  ;;  %v722_v45 = vpack.c.bf16 %v277_v41, %v273_v40  ;;  %v281_v48 = vld [vmem:[%s1513_s3 + $0x98] sm:$0xff] }
  0x43   :  { %v362_v1 = vld [vmem:[%s1513_s3 + $0x320] sm:$0xff]  ;;  %v101_v4 = vld [vmem:[%s1511_s1 + $0x268] sm:$0xff]  ;;  %v706_v6 = vpack.c.bf16 %v371_v3, %v367_v2  ;;  %v285_v49 = vld [vmem:[%s1513_s3 + $0xb8] sm:$0xff] }
  0x44   :  { %183 = vmatmul.mubr.f32.vlgmr.msra.gmra.mrb[0].mxu0 %v21_v37  ;;  %697 = vmatpush1.bf16.msra.mxu1 %v696_v50  ;;  %v704_v5 = vpack.c.bf16 %v362_v1, %v358_v0  ;;  %v366_v7 = vld [vmem:[%s1513_s3 + $0x340] sm:$0xff]  ;;  %v375_v10 = vld [vmem:[%s1513_s3 + $0x388] sm:$0xff]  ;;  %v264_v37 = vld [vmem:[%s1513_s3 + $0x10] sm:$0xff]  ;;  %v724_v50 = vpack.c.bf16 %v276_v47, %v272_v46 }
  0x45   :  { %645 = vmatpush1.bf16.msra.mxu0 %v644_v39  ;;  %253 = vmatprep.mubr.f32.mxu0 %v812_v53  ;;  %v370_v8 = vld [vmem:[%s1513_s3 + $0x360] sm:$0xff]  ;;  %v379_v11 = vld [vmem:[%s1513_s3 + $0x3a8] sm:$0xff]  ;;  %v280_v52 = vld [vmem:[%s1513_s3 + $0x90] sm:$0xff] }
  0x46   :  { %647 = vmatprep.subr.bf16.mxu0 %v646_v43  ;;  %699 = vmatprep.subr.bf16.mxu1 %v698_v54  ;;  %v100_v9 = vld [vmem:[%s1511_s1 + $0x260] sm:$0xff]  ;;  %v708_v13 = vpack.c.bf16 %v370_v8, %v366_v7  ;;  %v710_v14 = vpack.c.bf16 %v379_v11, %v375_v10  ;;  %v383_v18 = vld [vmem:[%s1513_s3 + $0x3c8] sm:$0xff]  ;;  %v720_v43 = vpack.c.bf16 %v268_v38, %v264_v37  ;;  %v284_v53 = vld [vmem:[%s1513_s3 + $0xb0] sm:$0xff] }
  0x47   :  { %v374_v15 = vld [vmem:[%s1513_s3 + $0x380] sm:$0xff]  ;;  %v387_v19 = vld [vmem:[%s1513_s3 + $0x3e8] sm:$0xff]  ;;  %v289_v54 = vld [vmem:[%s1513_s3 + $0xd8] sm:$0xff]  ;;  %v728_v56 = vpack.c.bf16 %v284_v53, %v280_v52 }
  0x48   :  { %701 = vmatpush1.bf16.msra.mxu1 %v700_v61  ;;  %v378_v16 = vld [vmem:[%s1513_s3 + $0x3a0] sm:$0xff]  ;;  %v714_v20 = vpack.c.bf16 %v387_v19, %v383_v18  ;;  %v293_v55 = vld [vmem:[%s1513_s3 + $0xf8] sm:$0xff]  ;;  %v288_v58 = vld [vmem:[%s1513_s3 + $0xd0] sm:$0xff] }
  0x49   :  { %649 = vmatpush1.bf16.msra.mxu0 %v648_v51  ;;  %703 = vmatprep.subr.bf16.mxu1 %v702_v63  ;;  %v712_v17 = vpack.c.bf16 %v378_v16, %v374_v15  ;;  %v382_v21 = vld [vmem:[%s1513_s3 + $0x3c0] sm:$0xff]  ;;  %v726_v51 = vpack.c.bf16 %v285_v49, %v281_v48  ;;  %v292_v59 = vld [vmem:[%s1513_s3 + $0xf0] sm:$0xff]  ;;  %v297_v60 = vld [vmem:[%s1513_s3 + $0x118] sm:$0xff] }
  0x4a   :  { %651 = vmatprep.subr.bf16.mxu0 %v650_v57  ;;  %v386_v22 = vld [vmem:[%s1513_s3 + $0x3e0] sm:$0xff]  ;;  %v730_v57 = vpack.c.bf16 %v293_v55, %v289_v54  ;;  %v301_v61 = vld [vmem:[%s1513_s3 + $0x138] sm:$0xff]  ;;  %v296_v0 = vld [vmem:[%s1513_s3 + $0x110] sm:$0xff] }
  0x4b   :  { %v716_v23 = vpack.c.bf16 %v386_v22, %v382_v21  ;;  %v102_v30 = vld [vmem:[%s1512_s2] sm:$0x3]  ;;  %v734_v63 = vpack.c.bf16 %v301_v61, %v297_v60  ;;  %v300_v1 = vld [vmem:[%s1513_s3 + $0x130] sm:$0xff]  ;;  %v305_v2 = vld [vmem:[%s1513_s3 + $0x158] sm:$0xff] }
  0x4c   :  { %705 = vmatpush1.bf16.msra.mxu1 %v704_v5  ;;  %v107_v32 = vrot.slane %v102_v30, %v106_v29  ;;  %v111_v33 = vrot.slane %v102_v30, %v110_v31  ;;  %v309_v3 = vld [vmem:[%s1513_s3 + $0x178] sm:$0xff]  ;;  %v308_v7 = vld [vmem:[%s1513_s3 + $0x170] sm:$0xff] }
  0x4d   :  { %653 = vmatpush1.bf16.msra.mxu0 %v652_v62  ;;  %707 = vmatprep.subr.bf16.mxu1 %v706_v6  ;;  %v732_v62 = vpack.c.bf16 %v292_v59, %v288_v58  ;;  %v738_v5 = vpack.c.bf16 %v309_v3, %v305_v2  ;;  %v304_v6 = vld [vmem:[%s1513_s3 + $0x150] sm:$0xff]  ;;  %v313_v8 = vld [vmem:[%s1513_s3 + $0x198] sm:$0xff] }
  0x4e   :  { %201 = vmatprep.subr.mxu0 %v101_v4  ;;  %v736_v4 = vpack.c.bf16 %v300_v1, %v296_v0  ;;  %v740_v10 = vpack.c.bf16 %v308_v7, %v304_v6  ;;  %v325_v15 = vld [vmem:[%s1513_s3 + $0x1f8] sm:$0xff]  ;;  %v320_v18 = vld [vmem:[%s1513_s3 + $0x1d0] sm:$0xff] }
  0x4f   :  { %v324_v19 = vld [vmem:[%s1513_s3 + $0x1f0] sm:$0xff]  ;;  %v333_v21 = vld [vmem:[%s1513_s3 + $0x238] sm:$0xff] }
  0x50   :  { %709 = vmatpush1.bf16.msra.mxu1 %v708_v13  ;;  %v316_v13 = vld [vmem:[%s1513_s3 + $0x1b0] sm:$0xff]  ;;  %v748_v22 = vpack.c.bf16 %v324_v19, %v320_v18  ;;  %v341_v27 = vld [vmem:[%s1513_s3 + $0x278] sm:$0xff] }
  0x51   :  { %202 = vmatpush1.msra.mxu0 %v100_v9  ;;  %711 = vmatprep.subr.bf16.mxu1 %v710_v14  ;;  %v317_v9 = vld [vmem:[%s1513_s3 + $0x1b8] sm:$0xff]  ;;  %v328_v24 = vld [vmem:[%s1513_s3 + $0x210] sm:$0xff] }
  0x52   :  { %577 = vmatmul.mubr.msk.f32.vlgmr.msra.gmra.mrb[0].mxu0 %vm114_vm0, %v23_v12  ;;  %v742_v11 = vpack.c.bf16 %v317_v9, %v313_v8  ;;  %v312_v12 = vld [vmem:[%s1513_s3 + $0x190] sm:$0xff]  ;;  %v321_v14 = vld [vmem:[%s1513_s3 + $0x1d8] sm:$0xff] }
  0x53   :  { %v744_v16 = vpack.c.bf16 %v316_v13, %v312_v12  ;;  %v332_v25 = vld [vmem:[%s1513_s3 + $0x230] sm:$0xff]  ;;  %v349_v37 = vld [vmem:[%s1513_s3 + $0x2b8] sm:$0xff] }
  0x54   :  { %713 = vmatpush1.bf16.msra.mxu1 %v712_v17  ;;  %v746_v17 = vpack.c.bf16 %v325_v15, %v321_v14  ;;  %v752_v30 = vpack.c.bf16 %v332_v25, %v328_v24  ;;  %v344_v40 = vld [vmem:[%s1513_s3 + $0x290] sm:$0xff]  ;;  %v361_v49 = vld [vmem:[%s1513_s3 + $0x318] sm:$0xff] }
  0x55   :  { %715 = vmatprep.subr.bf16.mxu1 %v714_v20  ;;  %v329_v20 = vld [vmem:[%s1513_s3 + $0x218] sm:$0xff]  ;;  %v348_v41 = vld [vmem:[%s1513_s3 + $0x2b0] sm:$0xff] }
  0x56   :  { %v352_v47 = vld [vmem:[%s1513_s3 + $0x2d0] sm:$0xff]  ;;  %v369_v55 = vld [vmem:[%s1513_s3 + $0x358] sm:$0xff] }
  0x57   :  { %v356_v48 = vld [vmem:[%s1513_s3 + $0x2f0] sm:$0xff]  ;;  %v377_v61 = vld [vmem:[%s1513_s3 + $0x398] sm:$0xff] }
  0x58   :  { %717 = vmatpush1.bf16.msra.mxu1 %v716_v23  ;;  %v750_v23 = vpack.c.bf16 %v333_v21, %v329_v20  ;;  %v360_v53 = vld [vmem:[%s1513_s3 + $0x310] sm:$0xff]  ;;  %v385_v3 = vld [vmem:[%s1513_s3 + $0x3d8] sm:$0xff] }
  0x59   :  { %719 = vmatprep.subr.bf16.mxu1 %v718_v26  ;;  %v337_v26 = vld [vmem:[%s1513_s3 + $0x258] sm:$0xff]  ;;  %v364_v54 = vld [vmem:[%s1513_s3 + $0x330] sm:$0xff] }
  0x5a   :  { %v368_v59 = vld [vmem:[%s1513_s3 + $0x350] sm:$0xff] }
  0x5b   :  { %v372_v60 = vld [vmem:[%s1513_s3 + $0x370] sm:$0xff] }
  0x5c   :  { %v376_v1 = vld [vmem:[%s1513_s3 + $0x390] sm:$0xff] }
  0x5d   :  { %v380_v2 = vld [vmem:[%s1513_s3 + $0x3b0] sm:$0xff] }
  0x5e   :  { %v384_v7 = vld [vmem:[%s1513_s3 + $0x3d0] sm:$0xff] }
  0x5f   :  { %v388_v8 = vld [vmem:[%s1513_s3 + $0x3f0] sm:$0xff] }
  0x60   :  { %v780_v9 = vpack.c.bf16 %v388_v8, %v384_v7 }
 0x125   :  { %v255_v34 = vpop.f32.mrb[0].mxu0 }
 0x126   :  { %v1296_v35 = vadd.f32 %v255_v34, %v107_v32  ;;  %v257_v36 = vpop.f32.mrb[1].mxu0  ;;  %v754_v32 = vpack.c.bf16 %v341_v27, %v337_v26  ;;  %v340_v34 = vld [vmem:[%s1513_s3 + $0x270] sm:$0xff] }
 0x127   :  { %v783_v39 = vadd.f32 %v257_v36, %v111_v33  ;;  %v336_v33 = vld [vmem:[%s1513_s3 + $0x250] sm:$0xff]  ;;  %v345_v36 = vld [vmem:[%s1513_s3 + $0x298] sm:$0xff] }
 0x128   :  { %v260_v44 = vmax.f32 %v1296_v35, 0.0  ;;  %v756_v38 = vpack.c.bf16 %v340_v34, %v336_v33  ;;  %v402_v35 = vsub.s32 2, %v1285_v28 }
 0x129   :  { %v261_v42 = vmax.f32 %v783_v39, 0.0  ;;  %v758_v39 = vpack.c.bf16 %v349_v37, %v345_v36 }
 0x12b   :  { %476 = vmatprep.mubr.f32.mxu1 %v261_v42 }
 0x12c   :  { %477 = vmatmul.mubr.f32.vlgmr.msra.gmra.mrb[0].mxu1 %v260_v44 }
 0x12d   :  { %721 = vmatpush1.bf16.msra.mxu1 %v720_v43  ;;  %547 = vmatprep.mubr.f32.mxu1 %v261_v42  ;;  %v353_v42 = vld [vmem:[%s1513_s3 + $0x2d8] sm:$0xff] }
 0x12e   :  { %723 = vmatprep.subr.bf16.mxu1 %v722_v45  ;;  %v357_v43 = vld [vmem:[%s1513_s3 + $0x2f8] sm:$0xff]  ;;  %v760_v45 = vpack.c.bf16 %v348_v41, %v344_v40 }
 0x12f   :  { %v762_v46 = vpack.c.bf16 %v357_v43, %v353_v42 }
 0x131   :  { %725 = vmatpush1.bf16.msra.mxu1 %v724_v50  ;;  %v365_v50 = vld [vmem:[%s1513_s3 + $0x338] sm:$0xff] }
 0x132   :  { %727 = vmatprep.subr.bf16.mxu1 %v726_v51  ;;  %v764_v51 = vpack.c.bf16 %v356_v48, %v352_v47  ;;  %v766_v52 = vpack.c.bf16 %v365_v50, %v361_v49 }
 0x135   :  { %729 = vmatpush1.bf16.msra.mxu1 %v728_v56  ;;  %v373_v56 = vld [vmem:[%s1513_s3 + $0x378] sm:$0xff] }
 0x136   :  { %731 = vmatprep.subr.bf16.mxu1 %v730_v57  ;;  %v768_v57 = vpack.c.bf16 %v364_v54, %v360_v53  ;;  %v770_v58 = vpack.c.bf16 %v373_v56, %v369_v55 }
 0x139   :  { %733 = vmatpush1.bf16.msra.mxu1 %v732_v62  ;;  %v381_v62 = vld [vmem:[%s1513_s3 + $0x3b8] sm:$0xff] }
 0x13a   :  { %735 = vmatprep.subr.bf16.mxu1 %v734_v63  ;;  %v772_v63 = vpack.c.bf16 %v372_v60, %v368_v59  ;;  %v774_v0 = vpack.c.bf16 %v381_v62, %v377_v61 }
 0x13d   :  { %737 = vmatpush1.bf16.msra.mxu1 %v736_v4  ;;  %v389_v4 = vld [vmem:[%s1513_s3 + $0x3f8] sm:$0xff]  ;;  %s813_s3 = smov [#allocation2]  }
 0x13e   :  { %739 = vmatprep.subr.bf16.mxu1 %v738_v5  ;;  %v776_v5 = vpack.c.bf16 %v380_v2, %v376_v1  ;;  %v778_v6 = vpack.c.bf16 %v389_v4, %v385_v3 }
 0x141   :  { %741 = vmatpush1.bf16.msra.mxu1 %v740_v10  ;;  %v390_v10 = vld [vmem:[%s1514_s4] sm:$0xf]  ;;  %s569_s4 = sshll.u32 %s813_s3, 4  ;;  %s570_s4 = int_to_ptr.vmem [resolvable:$true] %s569_s4 }
 0x142   :  { %743 = vmatprep.subr.bf16.mxu1 %v742_v11  ;;  %v395_v11 = vrot.slane %v390_v10, %v106_v29  ;;  %v399_v12 = vrot.slane %v390_v10, %v110_v31  ;;  %v403_v19 = vrot.slane %v390_v10, %v402_v35  ;;  %s788_s0 = scalar_lea.vmem %s570_s4, 512  ;;  %p793_p1 = scmp.lt.s32.totalorder %s570_s4, %s570_s4 }
 0x143   :  { %p789_p0 = scmp.ne.s32.totalorder %s570_s4, %s788_s0  ;;  %p794_p2 = scmp.lt.s32.totalorder %s788_s0, %s788_s0 }
 0x145   :  { %745 = vmatpush1.bf16.msra.mxu1 %v744_v16  ;;  %p795_p3 = por %p794_p2, %p793_p1 }
 0x146   :  { %747 = vmatprep.subr.bf16.mxu1 %v746_v17 }
 0x147   :  { %p796_p4 = pnand %p795_p3, %p789_p0 }
 0x149   :  { %749 = vmatpush1.bf16.msra.mxu1 %v748_v22 }
 0x14a   :  { %751 = vmatprep.subr.bf16.mxu1 %v750_v23 }
 0x14d   :  { %753 = vmatpush1.bf16.msra.mxu1 %v752_v30 }
 0x14e   :  { %755 = vmatprep.subr.bf16.mxu1 %v754_v32 }
 0x151   :  { %757 = vmatpush1.bf16.msra.mxu1 %v756_v38 }
 0x152   :  { %759 = vmatprep.subr.bf16.mxu1 %v758_v39 }
 0x155   :  { %761 = vmatpush1.bf16.msra.mxu1 %v760_v45 }
 0x156   :  { %763 = vmatprep.subr.bf16.mxu1 %v762_v46 }
 0x159   :  { %765 = vmatpush1.bf16.msra.mxu1 %v764_v51 }
 0x15a   :  { %767 = vmatprep.subr.bf16.mxu1 %v766_v52 }
 0x15d   :  { %769 = vmatpush1.bf16.msra.mxu1 %v768_v57 }
 0x15e   :  { %771 = vmatprep.subr.bf16.mxu1 %v770_v58 }
 0x161   :  { %773 = vmatpush1.bf16.msra.mxu1 %v772_v63 }
 0x162   :  { %775 = vmatprep.subr.bf16.mxu1 %v774_v0 }
 0x165   :  { %777 = vmatpush1.bf16.msra.mxu1 %v776_v5 }
 0x166   :  { %779 = vmatprep.subr.bf16.mxu1 %v778_v6 }
 0x169   :  { %781 = vmatpush1.bf16.msra.mxu1 %v780_v9 }
 0x16c   :  { %548 = vmatmul.mubr.f32.vlgmr.msra.gmra.mrb[2].mxu1 %v260_v44  ;;  %v406_v44 = vsub.s32 3, %v1285_v28 }
 0x16e   :  { %v407_v20 = vrot.slane %v390_v10, %v406_v44 }
 0x1ff   :  { %v478_v13 = vpop.f32.mrb[0].mxu1 }
 0x200   :  { %v479_v14 = vadd.f32 %v478_v13, %v395_v11  ;;  %v480_v15 = vpop.f32.mrb[1].mxu1 }
 0x201   :  { %v481_v16 = vadd.f32 %v480_v15, %v399_v12 }
 0x202   :  { %v554_v17 = vmax.f32 %v479_v14, 0.0 }
 0x203   :  { %v555_v18 = vmax.f32 %v481_v16, 0.0 }
 0x204   :  { %558 = vst [vmem:[#allocation2] sm:$0xff] %v554_v17 }
 0x205   :  { %559 = vst [vmem:[#allocation2 + $0x8] sm:$0xff] %v555_v18 }
 0x23f   :  { %v549_v21 = vpop.f32.mrb[2].mxu1 }
 0x240   :  { %v550_v22 = vadd.f32 %v549_v21, %v403_v19  ;;  %v551_v29 = vpop.f32.mrb[3].mxu1 }
 0x241   :  { %v552_v31 = vadd.f32 %v551_v29, %v407_v20 }
 0x242   :  { %v556_v23 = vmax.f32 %v550_v22, 0.0 }
 0x243   :  { %v557_v24 = vmax.f32 %v552_v31, 0.0 }
 0x244   :  { %560 = vst [vmem:[#allocation2 + $0x10] sm:$0xff] %v556_v23 }
 0x245   :  { %562 = vst.msk [vmem:[#allocation2 + $0x18] sm:$0xff] %vm561_vm1, %v557_v24 }
 0x246   :  { %799 = shalt.err (!%p796_p4)
}
 0x247   :  { %s800_s26 = scalar_lea.hbm %s1515_s5, 512 }
 0x248   :  { %p801_p5 = scmp.ne.s32.totalorder %s1515_s5, %s800_s26  ;;  %p804_p6 = scmp.lt.u32.totalorder %s800_s26, %s1515_s5 }
 0x24a   :  { %p806_p7 = pnand %p804_p6, %p801_p5 }
 0x24c   :  { %809 = shalt.err (!%p806_p7)
}
 0x24d   :  { %572 = dma.vmem_to_hbm [thread:$0]  %s570_s4, 512, %s1515_s5, [#allocation3]  }
 0x24e   :  { %810 = dma.done.wait [#allocation3], 512  }
 0x24f   :  { %811 = vsyncadd [#allocation3], 4294966784 }
 0x250   :  { %576 = vsyncpa [#allocation3], 1 }

</bundles_post_ra>
